<compile_context>
chip_gen: v7x
topology: tpu7x:2x2x1
jax: 0.10.0
libtpu: 0.0.40
codegen_flags: <defaults>
</compile_context>

<pallas_src>
import functools

import jax
import jax.numpy as jnp
import numpy as np
from jax import lax
from jax.experimental import pallas as pl
from jax.experimental.pallas import tpu as pltpu


def _pick_tile(total, target, quantum):
    """Largest tile <= target that divides `total` and is a multiple of
    `quantum`; falls back to the full dimension otherwise."""
    if total <= target:
        return total
    cand = (min(target, total) // quantum) * quantum
    while cand >= quantum:
        if total % cand == 0:
            return cand
        cand -= quantum
    # TODO(synk): pad + mask instead of a full-dim fallback for awkward N.
    return total


def _ot_loss_kernel(tears_macrid,
                    recon_ref, text_ref, rec_ref, x_ref,
                    mu_ref, logvar_ref, rec_mu_ref, rec_logvar_ref,
                    out_ref,
                    m_sc, l_sc, szx_sc, sx_sc):
    k = pl.program_id(1)
    nk = pl.num_programs(1)

    @pl.when(k == 0)
    def _init():
        m_sc[...] = jnp.full(m_sc.shape, -jnp.inf, m_sc.dtype)
        l_sc[...] = jnp.zeros_like(l_sc)
        szx_sc[...] = jnp.zeros_like(szx_sc)
        sx_sc[...] = jnp.zeros_like(sx_sc)

    x = x_ref[...].astype(jnp.float32)
    sx_sc[...] += jnp.sum(x, axis=1, keepdims=True)

    # Online log-softmax accumulators per logits stream:
    #   m = running row max, l = running sum exp(z - m), szx = running sum(z*x).
    # Per-row BCE term is later:  sum(z*x) - (m + log l) * sum(x).
    for q, z_ref in enumerate((recon_ref, text_ref, rec_ref)):
        z = z_ref[...].astype(jnp.float32)
        m_prev = m_sc[q]
        m_new = jnp.maximum(m_prev, jnp.max(z, axis=1, keepdims=True))
        alpha = jnp.exp(m_prev - m_new)
        l_sc[q] = l_sc[q] * alpha + jnp.sum(jnp.exp(z - m_new), axis=1, keepdims=True)
        szx_sc[q] = szx_sc[q] + jnp.sum(z * x, axis=1, keepdims=True)
        m_sc[q] = m_new

    @pl.when(k == nk - 1)
    def _finalize():
        sx = sx_sc[...]                                   # (tb, 1)
        partials = []
        for q in range(3):
            lse = m_sc[q] + jnp.log(l_sc[q])              # (tb, 1)
            partials.append(jnp.sum(szx_sc[q] - lse * sx))  # scalar per stream

        mu = mu_ref[...].astype(jnp.float32)
        logvar = logvar_ref[...].astype(jnp.float32)
        rec_mu = rec_mu_ref[...].astype(jnp.float32)
        rec_logvar = rec_logvar_ref[...].astype(jnp.float32)

        sigma2 = jnp.exp(logvar)
        sigma2_rec = jnp.exp(rec_logvar)
        if tears_macrid:
            kld_p = jnp.sum(1.0 + logvar - sigma2)
        else:
            kld_p = jnp.sum(1.0 + logvar - mu * mu - sigma2)

        # Bures-Wasserstein between diagonal Gaussians (exact closed form of the
        # cholesky/bmm/trace chain in the PyTorch module).
        diff = mu - rec_mu
        wass_p = (jnp.sum(diff * diff) + jnp.sum(sigma2) + jnp.sum(sigma2_rec)
                  - 2.0 * jnp.sum(jnp.sqrt(sigma2 * sigma2_rec)))

        # Pack the 5 scalar partials into a lane-dense (8, 128) tile:
        # sublane row r (broadcast over lanes) holds partial r.
        sub = lax.broadcasted_iota(jnp.int32, (8, 128), 0)
        tile = jnp.zeros((8, 128), jnp.float32)
        for idx, val in enumerate((partials[0], partials[1], partials[2],
                                   kld_p, wass_p)):
            tile = jnp.where(sub == idx, val, tile)
        out_ref[...] = tile[None, :, :]


def ot_loss_pallas(recon_x, logits_text, logits_rec, x,
                   mu, logvar, rec_mu, rec_logvar,
                   anneal, epsilon, *,
                   recon_tau=1.0, text_tau=1.0, rec_tau=1.0,
                   tears_macrid=False,
                   batch_tile=256, n_tile=2048):
    B, N = x.shape
    _, D = mu.shape

    tb = _pick_tile(B, batch_tile, 8)     # sublane-multiple (or full B)
    tn = _pick_tile(N, n_tile, 128)       # lane-multiple (or full N)
    nb = B // tb
    nk = N // tn

    kernel = functools.partial(_ot_loss_kernel, bool(tears_macrid))

    logits_spec = pl.BlockSpec((tb, tn), lambda i, k: (i, k))
    emb_spec = pl.BlockSpec((tb, D), lambda i, k: (i, 0))   # constant over k -> fetched once

    partials = pl.pallas_call(
        kernel,
        out_shape=jax.ShapeDtypeStruct((nb, 8, 128), jnp.float32),
        grid_spec=pltpu.PrefetchScalarGridSpec(
            num_scalar_prefetch=0,
            grid=(nb, nk),
            in_specs=[logits_spec, logits_spec, logits_spec, logits_spec,
                      emb_spec, emb_spec, emb_spec, emb_spec],
            out_specs=pl.BlockSpec((1, 8, 128), lambda i, k: (i, 0, 0)),
            scratch_shapes=[pltpu.VMEM((3, tb, 1), jnp.float32),   # running max m
                            pltpu.VMEM((3, tb, 1), jnp.float32),   # running exp-sum l
                            pltpu.VMEM((3, tb, 1), jnp.float32),   # running sum(z*x)
                            pltpu.VMEM((tb, 1), jnp.float32)]),    # running sum(x)
        compiler_params=pltpu.CompilerParams(
            dimension_semantics=("parallel", "arbitrary"),
            vmem_limit_bytes=48 * 1024 * 1024),
    )(recon_x, logits_text, logits_rec, x, mu, logvar, rec_mu, rec_logvar)

    # Tiny JAX epilogue: reduce per-batch-tile partials and apply the scalar
    # tau / anneal / epsilon weighting.
    p = jnp.sum(partials[:, :, 0], axis=0)            # (8,)
    inv_bn = 1.0 / (B * N)
    bce_merged = -p[0] * inv_bn
    bce_text = -p[1] * inv_bn
    bce_rec = -p[2] * inv_bn
    bce = (1.0 / 3.0) * (bce_merged * recon_tau + bce_text * text_tau
                         + bce_rec * rec_tau)
    kld = -0.5 * p[3] / (B * D)
    wass = p[4] / B
    l = (bce + jnp.asarray(anneal, jnp.float32) * kld
         + jnp.asarray(epsilon, jnp.float32) * wass)
    return (l, bce, wass, bce_rec, bce_text, bce_merged)


def ot_loss_ref(recon_x, logits_text, logits_rec, x,
                mu, logvar, rec_mu, rec_logvar,
                anneal, epsilon, *,
                recon_tau=1.0, text_tau=1.0, rec_tau=1.0,
                tears_macrid=False):
    """Pure-JAX reference mirroring the PyTorch forward."""
    def bce_term(logits):
        logp = jax.nn.log_softmax(logits.astype(jnp.float32), axis=1)
        return -jnp.mean(jnp.mean(logp * x, axis=-1))

    bce_merged = bce_term(recon_x)
    bce_text = bce_term(logits_text)
    bce_rec = bce_term(logits_rec)
    bce = (1.0 / 3.0) * (bce_merged * recon_tau + bce_text * text_tau + bce_rec * rec_tau)

    if tears_macrid:
        kld = -0.5 * jnp.mean(1.0 + logvar - jnp.exp(logvar))
    else:
        kld = -0.5 * jnp.mean(jnp.mean(1.0 + logvar - mu ** 2 - jnp.exp(logvar), axis=1))

    sigma2 = jnp.exp(logvar)
    sigma2_rec = jnp.exp(rec_logvar)
    mean_dist_sq = jnp.sum((mu - rec_mu) ** 2, axis=1)
    trace_term = (jnp.sum(sigma2, axis=1) + jnp.sum(sigma2_rec, axis=1)
                  - 2.0 * jnp.sum(jnp.sqrt(sigma2 * sigma2_rec), axis=1))
    wass = jnp.mean(mean_dist_sq + trace_term)

    l = bce + anneal * kld + epsilon * wass
    return (l, bce, wass, bce_rec, bce_text, bce_merged)


if __name__ == "__main__":
    # Small synthetic shapes: B users, N items, D emb dim. Small tiles are
    # forced so the demo exercises the multi-tile grid (grid = (2, 4)).
    B, N, D = 16, 512, 32
    recon_tau, text_tau, rec_tau = 1.2, 0.8, 1.0
    anneal, epsilon = 0.5, 0.01

    key = jax.random.PRNGKey(0)
    k = jax.random.split(key, 8)
    recon_x = jax.random.normal(k[0], (B, N), jnp.float32)
    logits_text = jax.random.normal(k[1], (B, N), jnp.float32)
    logits_rec = jax.random.normal(k[2], (B, N), jnp.float32)
    x = (jax.random.uniform(k[3], (B, N)) < 0.1).astype(jnp.float32)  # multi-hot
    mu = jax.random.normal(k[4], (B, D), jnp.float32)
    logvar = 0.1 * jax.random.normal(k[5], (B, D), jnp.float32)
    rec_mu = jax.random.normal(k[6], (B, D), jnp.float32)
    rec_logvar = 0.1 * jax.random.normal(k[7], (B, D), jnp.float32)

    for tears_macrid in (False, True):
        out = ot_loss_pallas(recon_x, logits_text, logits_rec, x,
                             mu, logvar, rec_mu, rec_logvar,
                             anneal, epsilon,
                             recon_tau=recon_tau, text_tau=text_tau,
                             rec_tau=rec_tau, tears_macrid=tears_macrid,
                             batch_tile=8, n_tile=128)
        out = jax.block_until_ready(out)

        ref = ot_loss_ref(recon_x, logits_text, logits_rec, x,
                          mu, logvar, rec_mu, rec_logvar,
                          anneal, epsilon,
                          recon_tau=recon_tau, text_tau=text_tau,
                          rec_tau=rec_tau, tears_macrid=tears_macrid)

        for o, r in zip(out, ref):
            np.testing.assert_allclose(np.asarray(o), np.asarray(r),
                                       rtol=1e-5, atol=1e-5)

    print("KERNEL_OK")
</pallas_src>

<mosaic_0001>
module attributes {stable_mosaic.version = 11 : i64} {
  func.func @_ot_loss_kernel(%arg0: i32, %arg1: i32, %arg2: memref<8x128xf32, #tpu.memory_space<vmem>>, %arg3: memref<8x128xf32, #tpu.memory_space<vmem>>, %arg4: memref<8x128xf32, #tpu.memory_space<vmem>>, %arg5: memref<8x128xf32, #tpu.memory_space<vmem>>, %arg6: memref<8x32xf32, #tpu.memory_space<vmem>>, %arg7: memref<8x32xf32, #tpu.memory_space<vmem>>, %arg8: memref<8x32xf32, #tpu.memory_space<vmem>>, %arg9: memref<8x32xf32, #tpu.memory_space<vmem>>, %arg10: memref<1x8x128xf32, #tpu.memory_space<vmem>>, %arg11: memref<3x8x1xf32, #tpu.memory_space<vmem>>, %arg12: memref<3x8x1xf32, #tpu.memory_space<vmem>>, %arg13: memref<3x8x1xf32, #tpu.memory_space<vmem>>, %arg14: memref<8x1xf32, #tpu.memory_space<vmem>>) attributes {dimension_semantics = [#tpu.dimension_semantics<parallel>, #tpu.dimension_semantics<arbitrary>], iteration_bounds = array<i64: 2, 4>, scalar_prefetch = 0 : i64, scratch_operands = 4 : i64, tpu.core_type = #tpu.core_type<tc>, window_params = [{transform_indices = @transform_0, window_bounds = array<i64: 8, 128>}, {transform_indices = @transform_1, window_bounds = array<i64: 8, 128>}, {transform_indices = @transform_2, window_bounds = array<i64: 8, 128>}, {transform_indices = @transform_3, window_bounds = array<i64: 8, 128>}, {transform_indices = @transform_4, window_bounds = array<i64: 8, 32>}, {transform_indices = @transform_5, window_bounds = array<i64: 8, 32>}, {transform_indices = @transform_6, window_bounds = array<i64: 8, 32>}, {transform_indices = @transform_7, window_bounds = array<i64: 8, 32>}, {transform_indices = @transform_8, window_bounds = array<i64: 1, 8, 128>}]} {
    %c0_i32 = arith.constant 0 : i32
    %0 = arith.cmpi eq, %arg1, %c0_i32 : i32
    %1 = arith.extui %0 : i1 to i32
    %c0_i32_0 = arith.constant 0 : i32
    %2 = arith.cmpi ne, %1, %c0_i32_0 : i32
    scf.if %2 {
      %cst_74 = arith.constant 0xFF800000 : f32
      %108 = vector.broadcast %cst_74 : f32 to vector<3x8x1xf32>
      %c0_75 = arith.constant 0 : index
      %c0_76 = arith.constant 0 : index
      %c0_77 = arith.constant 0 : index
      %109 = vector.load %arg11[%c0_75, %c0_76, %c0_77] : memref<3x8x1xf32, #tpu.memory_space<vmem>>, vector<3x8x1xf32>
      tpu.vector_store %arg11[%c0_75, %c0_76, %c0_77], %108 {strides = array<i32>} : memref<3x8x1xf32, #tpu.memory_space<vmem>>, vector<3x8x1xf32>,
      %cst_78 = arith.constant 0.000000e+00 : f32
      %110 = vector.broadcast %cst_78 : f32 to vector<3x8x1xf32>
      %c0_79 = arith.constant 0 : index
      %c0_80 = arith.constant 0 : index
      %c0_81 = arith.constant 0 : index
      %111 = vector.load %arg12[%c0_79, %c0_80, %c0_81] : memref<3x8x1xf32, #tpu.memory_space<vmem>>, vector<3x8x1xf32>
      tpu.vector_store %arg12[%c0_79, %c0_80, %c0_81], %110 {strides = array<i32>} : memref<3x8x1xf32, #tpu.memory_space<vmem>>, vector<3x8x1xf32>,
      %cst_82 = arith.constant 0.000000e+00 : f32
      %112 = vector.broadcast %cst_82 : f32 to vector<3x8x1xf32>
      %c0_83 = arith.constant 0 : index
      %c0_84 = arith.constant 0 : index
      %c0_85 = arith.constant 0 : index
      %113 = vector.load %arg13[%c0_83, %c0_84, %c0_85] : memref<3x8x1xf32, #tpu.memory_space<vmem>>, vector<3x8x1xf32>
      tpu.vector_store %arg13[%c0_83, %c0_84, %c0_85], %112 {strides = array<i32>} : memref<3x8x1xf32, #tpu.memory_space<vmem>>, vector<3x8x1xf32>,
      %cst_86 = arith.constant 0.000000e+00 : f32
      %114 = vector.broadcast %cst_86 : f32 to vector<8x1xf32>
      %c0_87 = arith.constant 0 : index
      %c0_88 = arith.constant 0 : index
      %115 = vector.load %arg14[%c0_87, %c0_88] : memref<8x1xf32, #tpu.memory_space<vmem>>, vector<8x1xf32>
      tpu.vector_store %arg14[%c0_87, %c0_88], %114 {strides = array<i32>} : memref<8x1xf32, #tpu.memory_space<vmem>>, vector<8x1xf32>,
    } else {
    }
    %c0 = arith.constant 0 : index
    %c0_1 = arith.constant 0 : index
    %3 = vector.load %arg5[%c0, %c0_1] : memref<8x128xf32, #tpu.memory_space<vmem>>, vector<8x128xf32>
    %c0_2 = arith.constant 0 : index
    %c0_3 = arith.constant 0 : index
    %4 = vector.load %arg14[%c0_2, %c0_3] : memref<8x1xf32, #tpu.memory_space<vmem>>, vector<8x1xf32>
    %cst = arith.constant dense<0.000000e+00> : vector<8xf32>
    %5 = vector.multi_reduction <add>, %3, %cst [1] : vector<8x128xf32> to vector<8xf32>
    %6 = vector.shape_cast %5 : vector<8xf32> to vector<8x1xf32>
    %7 = arith.addf %4, %6 : vector<8x1xf32>
    %c0_4 = arith.constant 0 : index
    %c0_5 = arith.constant 0 : index
    %8 = vector.load %arg14[%c0_4, %c0_5] : memref<8x1xf32, #tpu.memory_space<vmem>>, vector<8x1xf32>
    tpu.vector_store %arg14[%c0_4, %c0_5], %7 {strides = array<i32>} : memref<8x1xf32, #tpu.memory_space<vmem>>, vector<8x1xf32>,
    %c0_6 = arith.constant 0 : index
    %c0_7 = arith.constant 0 : index
    %9 = vector.load %arg2[%c0_6, %c0_7] : memref<8x128xf32, #tpu.memory_space<vmem>>, vector<8x128xf32>
    %c0_8 = arith.constant 0 : index
    %c0_9 = arith.constant 0 : index
    %c0_10 = arith.constant 0 : index
    %10 = vector.load %arg11[%c0_8, %c0_9, %c0_10] : memref<3x8x1xf32, #tpu.memory_space<vmem>>, vector<1x8x1xf32>
    %11 = vector.shape_cast %10 : vector<1x8x1xf32> to vector<8x1xf32>
    %cst_11 = arith.constant dense<0xFF800000> : vector<8xf32>
    %12 = vector.multi_reduction <maximumf>, %9, %cst_11 [1] : vector<8x128xf32> to vector<8xf32>
    %13 = vector.shape_cast %12 : vector<8xf32> to vector<8x1xf32>
    %14 = arith.maximumf %11, %13 : vector<8x1xf32>
    %15 = arith.subf %11, %14 : vector<8x1xf32>
    %16 = math.exp %15 : vector<8x1xf32>
    %c0_12 = arith.constant 0 : index
    %c0_13 = arith.constant 0 : index
    %c0_14 = arith.constant 0 : index
    %17 = vector.load %arg12[%c0_12, %c0_13, %c0_14] : memref<3x8x1xf32, #tpu.memory_space<vmem>>, vector<1x8x1xf32>
    %18 = vector.shape_cast %17 : vector<1x8x1xf32> to vector<8x1xf32>
    %19 = arith.mulf %18, %16 : vector<8x1xf32>
    %20 = vector.broadcast %14 : vector<8x1xf32> to vector<8x128xf32>
    %21 = arith.subf %9, %20 : vector<8x128xf32>
    %22 = math.exp %21 : vector<8x128xf32>
    %cst_15 = arith.constant dense<0.000000e+00> : vector<8xf32>
    %23 = vector.multi_reduction <add>, %22, %cst_15 [1] : vector<8x128xf32> to vector<8xf32>
    %24 = vector.shape_cast %23 : vector<8xf32> to vector<8x1xf32>
    %25 = arith.addf %19, %24 : vector<8x1xf32>
    %c0_16 = arith.constant 0 : index
    %c0_17 = arith.constant 0 : index
    %c0_18 = arith.constant 0 : index
    %26 = vector.load %arg12[%c0_16, %c0_17, %c0_18] : memref<3x8x1xf32, #tpu.memory_space<vmem>>, vector<1x8x1xf32>
    %27 = vector.shape_cast %26 : vector<1x8x1xf32> to vector<8x1xf32>
    %28 = vector.shape_cast %25 : vector<8x1xf32> to vector<1x8x1xf32>
    tpu.vector_store %arg12[%c0_16, %c0_17, %c0_18], %28 {strides = array<i32>} : memref<3x8x1xf32, #tpu.memory_space<vmem>>, vector<1x8x1xf32>,
    %c0_19 = arith.constant 0 : index
    %c0_20 = arith.constant 0 : index
    %c0_21 = arith.constant 0 : index
    %29 = vector.load %arg13[%c0_19, %c0_20, %c0_21] : memref<3x8x1xf32, #tpu.memory_space<vmem>>, vector<1x8x1xf32>
    %30 = vector.shape_cast %29 : vector<1x8x1xf32> to vector<8x1xf32>
    %31 = arith.mulf %9, %3 : vector<8x128xf32>
    %cst_22 = arith.constant dense<0.000000e+00> : vector<8xf32>
    %32 = vector.multi_reduction <add>, %31, %cst_22 [1] : vector<8x128xf32> to vector<8xf32>
    %33 = vector.shape_cast %32 : vector<8xf32> to vector<8x1xf32>
    %34 = arith.addf %30, %33 : vector<8x1xf32>
    %c0_23 = arith.constant 0 : index
    %c0_24 = arith.constant 0 : index
    %c0_25 = arith.constant 0 : index
    %35 = vector.load %arg13[%c0_23, %c0_24, %c0_25] : memref<3x8x1xf32, #tpu.memory_space<vmem>>, vector<1x8x1xf32>
    %36 = vector.shape_cast %35 : vector<1x8x1xf32> to vector<8x1xf32>
    %37 = vector.shape_cast %34 : vector<8x1xf32> to vector<1x8x1xf32>
    tpu.vector_store %arg13[%c0_23, %c0_24, %c0_25], %37 {strides = array<i32>} : memref<3x8x1xf32, #tpu.memory_space<vmem>>, vector<1x8x1xf32>,
    %c0_26 = arith.constant 0 : index
    %c0_27 = arith.constant 0 : index
    %c0_28 = arith.constant 0 : index
    %38 = vector.load %arg11[%c0_26, %c0_27, %c0_28] : memref<3x8x1xf32, #tpu.memory_space<vmem>>, vector<1x8x1xf32>
    %39 = vector.shape_cast %38 : vector<1x8x1xf32> to vector<8x1xf32>
    %40 = vector.shape_cast %14 : vector<8x1xf32> to vector<1x8x1xf32>
    tpu.vector_store %arg11[%c0_26, %c0_27, %c0_28], %40 {strides = array<i32>} : memref<3x8x1xf32, #tpu.memory_space<vmem>>, vector<1x8x1xf32>,
    %c0_29 = arith.constant 0 : index
    %c0_30 = arith.constant 0 : index
    %41 = vector.load %arg3[%c0_29, %c0_30] : memref<8x128xf32, #tpu.memory_space<vmem>>, vector<8x128xf32>
    %c1 = arith.constant 1 : index
    %c0_31 = arith.constant 0 : index
    %c0_32 = arith.constant 0 : index
    %42 = vector.load %arg11[%c1, %c0_31, %c0_32] : memref<3x8x1xf32, #tpu.memory_space<vmem>>, vector<1x8x1xf32>
    %43 = vector.shape_cast %42 : vector<1x8x1xf32> to vector<8x1xf32>
    %cst_33 = arith.constant dense<0xFF800000> : vector<8xf32>
    %44 = vector.multi_reduction <maximumf>, %41, %cst_33 [1] : vector<8x128xf32> to vector<8xf32>
    %45 = vector.shape_cast %44 : vector<8xf32> to vector<8x1xf32>
    %46 = arith.maximumf %43, %45 : vector<8x1xf32>
    %47 = arith.subf %43, %46 : vector<8x1xf32>
    %48 = math.exp %47 : vector<8x1xf32>
    %c1_34 = arith.constant 1 : index
    %c0_35 = arith.constant 0 : index
    %c0_36 = arith.constant 0 : index
    %49 = vector.load %arg12[%c1_34, %c0_35, %c0_36] : memref<3x8x1xf32, #tpu.memory_space<vmem>>, vector<1x8x1xf32>
    %50 = vector.shape_cast %49 : vector<1x8x1xf32> to vector<8x1xf32>
    %51 = arith.mulf %50, %48 : vector<8x1xf32>
    %52 = vector.broadcast %46 : vector<8x1xf32> to vector<8x128xf32>
    %53 = arith.subf %41, %52 : vector<8x128xf32>
    %54 = math.exp %53 : vector<8x128xf32>
    %cst_37 = arith.constant dense<0.000000e+00> : vector<8xf32>
    %55 = vector.multi_reduction <add>, %54, %cst_37 [1] : vector<8x128xf32> to vector<8xf32>
    %56 = vector.shape_cast %55 : vector<8xf32> to vector<8x1xf32>
    %57 = arith.addf %51, %56 : vector<8x1xf32>
    %c1_38 = arith.constant 1 : index
    %c0_39 = arith.constant 0 : index
    %c0_40 = arith.constant 0 : index
    %58 = vector.load %arg12[%c1_38, %c0_39, %c0_40] : memref<3x8x1xf32, #tpu.memory_space<vmem>>, vector<1x8x1xf32>
    %59 = vector.shape_cast %58 : vector<1x8x1xf32> to vector<8x1xf32>
    %60 = vector.shape_cast %57 : vector<8x1xf32> to vector<1x8x1xf32>
    tpu.vector_store %arg12[%c1_38, %c0_39, %c0_40], %60 {strides = array<i32>} : memref<3x8x1xf32, #tpu.memory_space<vmem>>, vector<1x8x1xf32>,
    %c1_41 = arith.constant 1 : index
    %c0_42 = arith.constant 0 : index
    %c0_43 = arith.constant 0 : index
    %61 = vector.load %arg13[%c1_41, %c0_42, %c0_43] : memref<3x8x1xf32, #tpu.memory_space<vmem>>, vector<1x8x1xf32>
    %62 = vector.shape_cast %61 : vector<1x8x1xf32> to vector<8x1xf32>
    %63 = arith.mulf %41, %3 : vector<8x128xf32>
    %cst_44 = arith.constant dense<0.000000e+00> : vector<8xf32>
    %64 = vector.multi_reduction <add>, %63, %cst_44 [1] : vector<8x128xf32> to vector<8xf32>
    %65 = vector.shape_cast %64 : vector<8xf32> to vector<8x1xf32>
    %66 = arith.addf %62, %65 : vector<8x1xf32>
    %c1_45 = arith.constant 1 : index
    %c0_46 = arith.constant 0 : index
    %c0_47 = arith.constant 0 : index
    %67 = vector.load %arg13[%c1_45, %c0_46, %c0_47] : memref<3x8x1xf32, #tpu.memory_space<vmem>>, vector<1x8x1xf32>
    %68 = vector.shape_cast %67 : vector<1x8x1xf32> to vector<8x1xf32>
    %69 = vector.shape_cast %66 : vector<8x1xf32> to vector<1x8x1xf32>
    tpu.vector_store %arg13[%c1_45, %c0_46, %c0_47], %69 {strides = array<i32>} : memref<3x8x1xf32, #tpu.memory_space<vmem>>, vector<1x8x1xf32>,
    %c1_48 = arith.constant 1 : index
    %c0_49 = arith.constant 0 : index
    %c0_50 = arith.constant 0 : index
    %70 = vector.load %arg11[%c1_48, %c0_49, %c0_50] : memref<3x8x1xf32, #tpu.memory_space<vmem>>, vector<1x8x1xf32>
    %71 = vector.shape_cast %70 : vector<1x8x1xf32> to vector<8x1xf32>
    %72 = vector.shape_cast %46 : vector<8x1xf32> to vector<1x8x1xf32>
    tpu.vector_store %arg11[%c1_48, %c0_49, %c0_50], %72 {strides = array<i32>} : memref<3x8x1xf32, #tpu.memory_space<vmem>>, vector<1x8x1xf32>,
    %c0_51 = arith.constant 0 : index
    %c0_52 = arith.constant 0 : index
    %73 = vector.load %arg4[%c0_51, %c0_52] : memref<8x128xf32, #tpu.memory_space<vmem>>, vector<8x128xf32>
    %c2 = arith.constant 2 : index
    %c0_53 = arith.constant 0 : index
    %c0_54 = arith.constant 0 : index
    %74 = vector.load %arg11[%c2, %c0_53, %c0_54] : memref<3x8x1xf32, #tpu.memory_space<vmem>>, vector<1x8x1xf32>
    %75 = vector.shape_cast %74 : vector<1x8x1xf32> to vector<8x1xf32>
    %cst_55 = arith.constant dense<0xFF800000> : vector<8xf32>
    %76 = vector.multi_reduction <maximumf>, %73, %cst_55 [1] : vector<8x128xf32> to vector<8xf32>
    %77 = vector.shape_cast %76 : vector<8xf32> to vector<8x1xf32>
    %78 = arith.maximumf %75, %77 : vector<8x1xf32>
    %79 = arith.subf %75, %78 : vector<8x1xf32>
    %80 = math.exp %79 : vector<8x1xf32>
    %c2_56 = arith.constant 2 : index
    %c0_57 = arith.constant 0 : index
    %c0_58 = arith.constant 0 : index
    %81 = vector.load %arg12[%c2_56, %c0_57, %c0_58] : memref<3x8x1xf32, #tpu.memory_space<vmem>>, vector<1x8x1xf32>
    %82 = vector.shape_cast %81 : vector<1x8x1xf32> to vector<8x1xf32>
    %83 = arith.mulf %82, %80 : vector<8x1xf32>
    %84 = vector.broadcast %78 : vector<8x1xf32> to vector<8x128xf32>
    %85 = arith.subf %73, %84 : vector<8x128xf32>
    %86 = math.exp %85 : vector<8x128xf32>
    %cst_59 = arith.constant dense<0.000000e+00> : vector<8xf32>
    %87 = vector.multi_reduction <add>, %86, %cst_59 [1] : vector<8x128xf32> to vector<8xf32>
    %88 = vector.shape_cast %87 : vector<8xf32> to vector<8x1xf32>
    %89 = arith.addf %83, %88 : vector<8x1xf32>
    %c2_60 = arith.constant 2 : index
    %c0_61 = arith.constant 0 : index
    %c0_62 = arith.constant 0 : index
    %90 = vector.load %arg12[%c2_60, %c0_61, %c0_62] : memref<3x8x1xf32, #tpu.memory_space<vmem>>, vector<1x8x1xf32>
    %91 = vector.shape_cast %90 : vector<1x8x1xf32> to vector<8x1xf32>
    %92 = vector.shape_cast %89 : vector<8x1xf32> to vector<1x8x1xf32>
    tpu.vector_store %arg12[%c2_60, %c0_61, %c0_62], %92 {strides = array<i32>} : memref<3x8x1xf32, #tpu.memory_space<vmem>>, vector<1x8x1xf32>,
    %c2_63 = arith.constant 2 : index
    %c0_64 = arith.constant 0 : index
    %c0_65 = arith.constant 0 : index
    %93 = vector.load %arg13[%c2_63, %c0_64, %c0_65] : memref<3x8x1xf32, #tpu.memory_space<vmem>>, vector<1x8x1xf32>
    %94 = vector.shape_cast %93 : vector<1x8x1xf32> to vector<8x1xf32>
    %95 = arith.mulf %73, %3 : vector<8x128xf32>
    %cst_66 = arith.constant dense<0.000000e+00> : vector<8xf32>
    %96 = vector.multi_reduction <add>, %95, %cst_66 [1] : vector<8x128xf32> to vector<8xf32>
    %97 = vector.shape_cast %96 : vector<8xf32> to vector<8x1xf32>
    %98 = arith.addf %94, %97 : vector<8x1xf32>
    %c2_67 = arith.constant 2 : index
    %c0_68 = arith.constant 0 : index
    %c0_69 = arith.constant 0 : index
    %99 = vector.load %arg13[%c2_67, %c0_68, %c0_69] : memref<3x8x1xf32, #tpu.memory_space<vmem>>, vector<1x8x1xf32>
    %100 = vector.shape_cast %99 : vector<1x8x1xf32> to vector<8x1xf32>
    %101 = vector.shape_cast %98 : vector<8x1xf32> to vector<1x8x1xf32>
    tpu.vector_store %arg13[%c2_67, %c0_68, %c0_69], %101 {strides = array<i32>} : memref<3x8x1xf32, #tpu.memory_space<vmem>>, vector<1x8x1xf32>,
    %c2_70 = arith.constant 2 : index
    %c0_71 = arith.constant 0 : index
    %c0_72 = arith.constant 0 : index
    %102 = vector.load %arg11[%c2_70, %c0_71, %c0_72] : memref<3x8x1xf32, #tpu.memory_space<vmem>>, vector<1x8x1xf32>
    %103 = vector.shape_cast %102 : vector<1x8x1xf32> to vector<8x1xf32>
    %104 = vector.shape_cast %78 : vector<8x1xf32> to vector<1x8x1xf32>
    tpu.vector_store %arg11[%c2_70, %c0_71, %c0_72], %104 {strides = array<i32>} : memref<3x8x1xf32, #tpu.memory_space<vmem>>, vector<1x8x1xf32>,
    %c3_i32 = arith.constant 3 : i32
    %105 = arith.cmpi eq, %arg1, %c3_i32 : i32
    %106 = arith.extui %105 : i1 to i32
    %c0_i32_73 = arith.constant 0 : i32
    %107 = arith.cmpi ne, %106, %c0_i32_73 : i32
    scf.if %107 {
      %c0_74 = arith.constant 0 : index
      %c0_75 = arith.constant 0 : index
      %108 = vector.load %arg14[%c0_74, %c0_75] : memref<8x1xf32, #tpu.memory_space<vmem>>, vector<8x1xf32>
      %c0_76 = arith.constant 0 : index
      %c0_77 = arith.constant 0 : index
      %c0_78 = arith.constant 0 : index
      %109 = vector.load %arg11[%c0_76, %c0_77, %c0_78] : memref<3x8x1xf32, #tpu.memory_space<vmem>>, vector<1x8x1xf32>
      %110 = vector.shape_cast %109 : vector<1x8x1xf32> to vector<8x1xf32>
      %c0_79 = arith.constant 0 : index
      %c0_80 = arith.constant 0 : index
      %c0_81 = arith.constant 0 : index
      %111 = vector.load %arg12[%c0_79, %c0_80, %c0_81] : memref<3x8x1xf32, #tpu.memory_space<vmem>>, vector<1x8x1xf32>
      %112 = vector.shape_cast %111 : vector<1x8x1xf32> to vector<8x1xf32>
      %113 = math.log %112 : vector<8x1xf32>
      %114 = arith.addf %110, %113 : vector<8x1xf32>
      %c0_82 = arith.constant 0 : index
      %c0_83 = arith.constant 0 : index
      %c0_84 = arith.constant 0 : index
      %115 = vector.load %arg13[%c0_82, %c0_83, %c0_84] : memref<3x8x1xf32, #tpu.memory_space<vmem>>, vector<1x8x1xf32>
      %116 = vector.shape_cast %115 : vector<1x8x1xf32> to vector<8x1xf32>
      %117 = arith.mulf %114, %108 : vector<8x1xf32>
      %118 = arith.subf %116, %117 : vector<8x1xf32>
      %119 = vector.shape_cast %118 : vector<8x1xf32> to vector<1x8x1xf32>
      %cst_85 = arith.constant dense<0.000000e+00> : vector<1xf32>
      %120 = vector.multi_reduction <add>, %119, %cst_85 [1, 2] : vector<1x8x1xf32> to vector<1xf32>
      %121 = vector.shape_cast %120 : vector<1xf32> to vector<1x1x1xf32>
      %122 = vector.extract %121[0, 0, 0] : f32 from vector<1x1x1xf32>
      %c1_86 = arith.constant 1 : index
      %c0_87 = arith.constant 0 : index
      %c0_88 = arith.constant 0 : index
      %123 = vector.load %arg11[%c1_86, %c0_87, %c0_88] : memref<3x8x1xf32, #tpu.memory_space<vmem>>, vector<1x8x1xf32>
      %124 = vector.shape_cast %123 : vector<1x8x1xf32> to vector<8x1xf32>
      %c1_89 = arith.constant 1 : index
      %c0_90 = arith.constant 0 : index
      %c0_91 = arith.constant 0 : index
      %125 = vector.load %arg12[%c1_89, %c0_90, %c0_91] : memref<3x8x1xf32, #tpu.memory_space<vmem>>, vector<1x8x1xf32>
      %126 = vector.shape_cast %125 : vector<1x8x1xf32> to vector<8x1xf32>
      %127 = math.log %126 : vector<8x1xf32>
      %128 = arith.addf %124, %127 : vector<8x1xf32>
      %c1_92 = arith.constant 1 : index
      %c0_93 = arith.constant 0 : index
      %c0_94 = arith.constant 0 : index
      %129 = vector.load %arg13[%c1_92, %c0_93, %c0_94] : memref<3x8x1xf32, #tpu.memory_space<vmem>>, vector<1x8x1xf32>
      %130 = vector.shape_cast %129 : vector<1x8x1xf32> to vector<8x1xf32>
      %131 = arith.mulf %128, %108 : vector<8x1xf32>
      %132 = arith.subf %130, %131 : vector<8x1xf32>
      %133 = vector.shape_cast %132 : vector<8x1xf32> to vector<1x8x1xf32>
      %cst_95 = arith.constant dense<0.000000e+00> : vector<1xf32>
      %134 = vector.multi_reduction <add>, %133, %cst_95 [1, 2] : vector<1x8x1xf32> to vector<1xf32>
      %135 = vector.shape_cast %134 : vector<1xf32> to vector<1x1x1xf32>
      %136 = vector.extract %135[0, 0, 0] : f32 from vector<1x1x1xf32>
      %c2_96 = arith.constant 2 : index
      %c0_97 = arith.constant 0 : index
      %c0_98 = arith.constant 0 : index
      %137 = vector.load %arg11[%c2_96, %c0_97, %c0_98] : memref<3x8x1xf32, #tpu.memory_space<vmem>>, vector<1x8x1xf32>
      %138 = vector.shape_cast %137 : vector<1x8x1xf32> to vector<8x1xf32>
      %c2_99 = arith.constant 2 : index
      %c0_100 = arith.constant 0 : index
      %c0_101 = arith.constant 0 : index
      %139 = vector.load %arg12[%c2_99, %c0_100, %c0_101] : memref<3x8x1xf32, #tpu.memory_space<vmem>>, vector<1x8x1xf32>
      %140 = vector.shape_cast %139 : vector<1x8x1xf32> to vector<8x1xf32>
      %141 = math.log %140 : vector<8x1xf32>
      %142 = arith.addf %138, %141 : vector<8x1xf32>
      %c2_102 = arith.constant 2 : index
      %c0_103 = arith.constant 0 : index
      %c0_104 = arith.constant 0 : index
      %143 = vector.load %arg13[%c2_102, %c0_103, %c0_104] : memref<3x8x1xf32, #tpu.memory_space<vmem>>, vector<1x8x1xf32>
      %144 = vector.shape_cast %143 : vector<1x8x1xf32> to vector<8x1xf32>
      %145 = arith.mulf %142, %108 : vector<8x1xf32>
      %146 = arith.subf %144, %145 : vector<8x1xf32>
      %147 = vector.shape_cast %146 : vector<8x1xf32> to vector<1x8x1xf32>
      %cst_105 = arith.constant dense<0.000000e+00> : vector<1xf32>
      %148 = vector.multi_reduction <add>, %147, %cst_105 [1, 2] : vector<1x8x1xf32> to vector<1xf32>
      %149 = vector.shape_cast %148 : vector<1xf32> to vector<1x1x1xf32>
      %150 = vector.extract %149[0, 0, 0] : f32 from vector<1x1x1xf32>
      %c0_106 = arith.constant 0 : index
      %c0_107 = arith.constant 0 : index
      %151 = vector.load %arg6[%c0_106, %c0_107] : memref<8x32xf32, #tpu.memory_space<vmem>>, vector<8x32xf32>
      %c0_108 = arith.constant 0 : index
      %c0_109 = arith.constant 0 : index
      %152 = vector.load %arg7[%c0_108, %c0_109] : memref<8x32xf32, #tpu.memory_space<vmem>>, vector<8x32xf32>
      %c0_110 = arith.constant 0 : index
      %c0_111 = arith.constant 0 : index
      %153 = vector.load %arg8[%c0_110, %c0_111] : memref<8x32xf32, #tpu.memory_space<vmem>>, vector<8x32xf32>
      %c0_112 = arith.constant 0 : index
      %c0_113 = arith.constant 0 : index
      %154 = vector.load %arg9[%c0_112, %c0_113] : memref<8x32xf32, #tpu.memory_space<vmem>>, vector<8x32xf32>
      %155 = math.exp %152 : vector<8x32xf32>
      %156 = math.exp %154 : vector<8x32xf32>
      %cst_114 = arith.constant 1.000000e+00 : f32
      %157 = vector.broadcast %cst_114 : f32 to vector<8x32xf32>
      %158 = arith.addf %157, %152 : vector<8x32xf32>
      %159 = arith.mulf %151, %151 : vector<8x32xf32>
      %160 = arith.subf %158, %159 : vector<8x32xf32>
      %161 = arith.subf %160, %155 : vector<8x32xf32>
      %162 = vector.shape_cast %161 : vector<8x32xf32> to vector<1x8x32xf32>
      %cst_115 = arith.constant dense<0.000000e+00> : vector<1xf32>
      %163 = vector.multi_reduction <add>, %162, %cst_115 [1, 2] : vector<1x8x32xf32> to vector<1xf32>
      %164 = vector.shape_cast %163 : vector<1xf32> to vector<1x1x1xf32>
      %165 = vector.extract %164[0, 0, 0] : f32 from vector<1x1x1xf32>
      %166 = arith.subf %151, %153 : vector<8x32xf32>
      %167 = arith.mulf %166, %166 : vector<8x32xf32>
      %168 = vector.shape_cast %167 : vector<8x32xf32> to vector<1x8x32xf32>
      %cst_116 = arith.constant dense<0.000000e+00> : vector<1xf32>
      %169 = vector.multi_reduction <add>, %168, %cst_116 [1, 2] : vector<1x8x32xf32> to vector<1xf32>
      %170 = vector.shape_cast %169 : vector<1xf32> to vector<1x1x1xf32>
      %171 = vector.extract %170[0, 0, 0] : f32 from vector<1x1x1xf32>
      %172 = vector.shape_cast %155 : vector<8x32xf32> to vector<1x8x32xf32>
      %cst_117 = arith.constant dense<0.000000e+00> : vector<1xf32>
      %173 = vector.multi_reduction <add>, %172, %cst_117 [1, 2] : vector<1x8x32xf32> to vector<1xf32>
      %174 = vector.shape_cast %173 : vector<1xf32> to vector<1x1x1xf32>
      %175 = vector.extract %174[0, 0, 0] : f32 from vector<1x1x1xf32>
      %176 = arith.addf %171, %175 : f32
      %177 = vector.shape_cast %156 : vector<8x32xf32> to vector<1x8x32xf32>
      %cst_118 = arith.constant dense<0.000000e+00> : vector<1xf32>
      %178 = vector.multi_reduction <add>, %177, %cst_118 [1, 2] : vector<1x8x32xf32> to vector<1xf32>
      %179 = vector.shape_cast %178 : vector<1xf32> to vector<1x1x1xf32>
      %180 = vector.extract %179[0, 0, 0] : f32 from vector<1x1x1xf32>
      %181 = arith.addf %176, %180 : f32
      %182 = arith.mulf %155, %156 : vector<8x32xf32>
      %183 = math.sqrt %182 : vector<8x32xf32>
      %184 = vector.shape_cast %183 : vector<8x32xf32> to vector<1x8x32xf32>
      %cst_119 = arith.constant dense<0.000000e+00> : vector<1xf32>
      %185 = vector.multi_reduction <add>, %184, %cst_119 [1, 2] : vector<1x8x32xf32> to vector<1xf32>
      %186 = vector.shape_cast %185 : vector<1xf32> to vector<1x1x1xf32>
      %187 = vector.extract %186[0, 0, 0] : f32 from vector<1x1x1xf32>
      %cst_120 = arith.constant 2.000000e+00 : f32
      %188 = arith.mulf %cst_120, %187 : f32
      %189 = arith.subf %181, %188 : f32
      %190 = tpu.iota {dimensions = array<i32: 0>} : vector<8x128xi32>
      %cst_121 = arith.constant 0.000000e+00 : f32
      %191 = vector.broadcast %cst_121 : f32 to vector<8x128xf32>
      %c0_i32_122 = arith.constant 0 : i32
      %192 = vector.broadcast %c0_i32_122 : i32 to vector<8x128xi32>
      %193 = arith.cmpi eq, %190, %192 : vector<8x128xi32>
      %194 = vector.broadcast %122 : f32 to vector<8x128xf32>
      %195 = arith.select %193, %194, %191 : vector<8x128xi1>, vector<8x128xf32>
      %c1_i32 = arith.constant 1 : i32
      %196 = vector.broadcast %c1_i32 : i32 to vector<8x128xi32>
      %197 = arith.cmpi eq, %190, %196 : vector<8x128xi32>
      %198 = vector.broadcast %136 : f32 to vector<8x128xf32>
      %199 = arith.select %197, %198, %195 : vector<8x128xi1>, vector<8x128xf32>
      %c2_i32 = arith.constant 2 : i32
      %200 = vector.broadcast %c2_i32 : i32 to vector<8x128xi32>
      %201 = arith.cmpi eq, %190, %200 : vector<8x128xi32>
      %202 = vector.broadcast %150 : f32 to vector<8x128xf32>
      %203 = arith.select %201, %202, %199 : vector<8x128xi1>, vector<8x128xf32>
      %c3_i32_123 = arith.constant 3 : i32
      %204 = vector.broadcast %c3_i32_123 : i32 to vector<8x128xi32>
      %205 = arith.cmpi eq, %190, %204 : vector<8x128xi32>
      %206 = vector.broadcast %165 : f32 to vector<8x128xf32>
      %207 = arith.select %205, %206, %203 : vector<8x128xi1>, vector<8x128xf32>
      %c4_i32 = arith.constant 4 : i32
      %208 = vector.broadcast %c4_i32 : i32 to vector<8x128xi32>
      %209 = arith.cmpi eq, %190, %208 : vector<8x128xi32>
      %210 = vector.broadcast %189 : f32 to vector<8x128xf32>
      %211 = arith.select %209, %210, %207 : vector<8x128xi1>, vector<8x128xf32>
      %212 = vector.shape_cast %211 : vector<8x128xf32> to vector<1x8x128xf32>
      %c0_124 = arith.constant 0 : index
      %c0_125 = arith.constant 0 : index
      %c0_126 = arith.constant 0 : index
      %213 = vector.load %arg10[%c0_124, %c0_125, %c0_126] : memref<1x8x128xf32, #tpu.memory_space<vmem>>, vector<1x8x128xf32>
      tpu.vector_store %arg10[%c0_124, %c0_125, %c0_126], %212 {strides = array<i32>} : memref<1x8x128xf32, #tpu.memory_space<vmem>>, vector<1x8x128xf32>,
    } else {
    }
    return
  }
  func.func @transform_0(%arg0: i32, %arg1: i32) -> (i32, i32) {
    %c0_i32 = arith.constant 0 : i32
    return %arg0, %arg1 : i32, i32
  }
  func.func @transform_1(%arg0: i32, %arg1: i32) -> (i32, i32) {
    %c0_i32 = arith.constant 0 : i32
    return %arg0, %arg1 : i32, i32
  }
  func.func @transform_2(%arg0: i32, %arg1: i32) -> (i32, i32) {
    %c0_i32 = arith.constant 0 : i32
    return %arg0, %arg1 : i32, i32
  }
  func.func @transform_3(%arg0: i32, %arg1: i32) -> (i32, i32) {
    %c0_i32 = arith.constant 0 : i32
    return %arg0, %arg1 : i32, i32
  }
  func.func @transform_4(%arg0: i32, %arg1: i32) -> (i32, i32) {
    %c0_i32 = arith.constant 0 : i32
    %c0_i32_0 = arith.constant 0 : i32
    return %arg0, %c0_i32 : i32, i32
  }
  func.func @transform_5(%arg0: i32, %arg1: i32) -> (i32, i32) {
    %c0_i32 = arith.constant 0 : i32
    %c0_i32_0 = arith.constant 0 : i32
    return %arg0, %c0_i32 : i32, i32
  }
  func.func @transform_6(%arg0: i32, %arg1: i32) -> (i32, i32) {
    %c0_i32 = arith.constant 0 : i32
    %c0_i32_0 = arith.constant 0 : i32
    return %arg0, %c0_i32 : i32, i32
  }
  func.func @transform_7(%arg0: i32, %arg1: i32) -> (i32, i32) {
    %c0_i32 = arith.constant 0 : i32
    %c0_i32_0 = arith.constant 0 : i32
    return %arg0, %c0_i32 : i32, i32
  }
  func.func @transform_8(%arg0: i32, %arg1: i32) -> (i32, i32, i32) {
    %c0_i32 = arith.constant 0 : i32
    %c0_i32_0 = arith.constant 0 : i32
    %c0_i32_1 = arith.constant 0 : i32
    return %arg0, %c0_i32, %c0_i32_0 : i32, i32, i32
  }
}

</mosaic_0001>

<bundles_post_ra>
// kernel: tpu_custom_call.1
= control target key start
LH: loop header
LB: loop body
LE: loop exit
PB: predicated region body
PF: predicated region fallthrough
CT: control target
= control target key end

     0   :  { %s2232_s0 = inlined_call_operand.hbm [shape: f32[16,512], index: 0, kind: input, shape index: {}]   ;;  %s2233_s1 = inlined_call_operand.hbm [shape: f32[16,512], index: 1, kind: input, shape index: {}]   ;;  %s2234_s2 = inlined_call_operand.hbm [shape: f32[16,512], index: 2, kind: input, shape index: {}]   ;;  %s2235_s3 = inlined_call_operand.hbm [shape: f32[16,512], index: 3, kind: input, shape index: {}]   ;;  %s2236_s4 = inlined_call_operand.hbm [shape: f32[16,32], index: 4, kind: input, shape index: {}]   ;;  %s2237_s5 = inlined_call_operand.vmem [shape: f32[16,32], index: 5, kind: input, shape index: {}]   ;;  %s2238_s6 = inlined_call_operand.hbm [shape: f32[16,32], index: 6, kind: input, shape index: {}]   ;;  %s2239_s7 = inlined_call_operand.hbm [shape: f32[16,32], index: 7, kind: input, shape index: {}]   ;;  %s2240_s8 = inlined_call_operand.hbm [shape: f32[2,8,128], index: 8, kind: output, shape index: {}]  }
   0x1   :  { %2268 = sst [smem:[#allocation39_spill]] %s2233_s1 }
   0x2   :  { %2269 = sst [smem:[#allocation40_spill]] %s2235_s3 }
   0x3   :  { %2270 = sst [smem:[#allocation41_spill]] %s2237_s5 }
   0x4   :  { %2271 = sst [smem:[#allocation42_spill]] %s2238_s6 }
   0x5   :  { %2272 = sst [smem:[#allocation43_spill]] %s2240_s8 }
   0x6   :  { %13 = vsyncpa [#allocation7], 0 }
   0x7   :  { %15 = vsyncpa [#allocation7 + $0x1], 0 }
   0x8   :  { %16 = vsyncpa [#allocation10], 0 }
   0x9   :  { %18 = vsyncpa [#allocation10 + $0x1], 0 }
   0xa   :  { %19 = vsyncpa [#allocation13], 0 }
   0xb   :  { %21 = vsyncpa [#allocation13 + $0x1], 0 }
   0xc   :  { %22 = vsyncpa [#allocation16], 0 }
   0xd   :  { %24 = vsyncpa [#allocation16 + $0x1], 0 }
   0xe   :  { %25 = vsyncpa [#allocation8], 0 }
   0xf   :  { %27 = vsyncpa [#allocation8 + $0x1], 0  ;;  %s1713_s27 = smov 0   ;;  %s1715_s28 = smov 0  }
  0x10   :  { %s1717_s29 = smov 0   ;;  %s1719_s30 = smov 0  }
  0x11   :  { %s1721_s9 = smov 0   ;;  %s1723_s10 = smov 0  }
  0x12   :  { %s1725_s11 = smov 0   ;;  %s1727_s12 = smov 0  }
  0x13   :  { %s1729_s13 = smov 0   ;;  %s1731_s14 = smov 0  }
  0x14   :  { %s1733_s15 = smov 0  }
  0x15 LB: > { %2273 = sst [smem:[#allocation25_spill]] %s1615_s27  ;;  %s42_s16 = sadd.s32 1, %s1647_s13  ;;  %s1655_s15 = sphi %s1733_s15, %s33_s15   ;;  %s1651_s14 = sphi %s1731_s14, %s2341_s14   ;;  %s1647_s13 = sphi %s1729_s13, %s2346_s13   ;;  %s1643_s12 = sphi %s1727_s12, %s2339_s12   ;;  %s1639_s11 = sphi %s1725_s11, %s2338_s11   ;;  %s1635_s10 = sphi %s1723_s10, %s2337_s10   ;;  %s1631_s9 = sphi %s1721_s9, %s2345_s9   ;;  %s1627_s30 = sphi %s1719_s30, %s2344_s30   ;;  %s1623_s29 = sphi %s1717_s29, %s2335_s29   ;;  %s1619_s28 = sphi %s1715_s28, %s2343_s28   ;;  %s1615_s27 = sphi %s1713_s27, %s2342_s27  }
  0x16   : > { %2274 = sst [smem:[#allocation26_spill]] %s1623_s29  ;;  %s45_s17 = sadd.s32 1, %s1651_s14 }
  0x17   : > { %2275 = sst [smem:[#allocation27_spill]] %s1635_s10  ;;  %p43_p0 = scmp.ge.s32.totalorder %s42_s16, 4 }
  0x18   : > { %2276 = sst [smem:[#allocation28_spill]] %s1639_s11  ;;  %s54_s18 = sadd.s32 1, %s1635_s10 }
  0x19   : > { %2277 = sst [smem:[#allocation29_spill]] %s1643_s12  ;;  %p61_p1 = scmp.ne.s32.totalorder %s1635_s10, %s1631_s9 }
  0x1a   : > { %2278 = sst [smem:[#allocation30_spill]] %s1647_s13  ;;  %p2247_p2 = scmp.eq.s32.totalorder %s1655_s15, 0 }
  0x1b   : > { %2279 = sst [smem:[#allocation31_spill]] %s1651_s14  ;;  %s2348_s16 = smov (%p43_p0, %s42_s16), 0 }
  0x1c   : > { %2280 = sst [smem:[#allocation32_spill]] %s1655_s15  ;;  %s2350_s17 = smov (!%p43_p0, %s45_s17), %s1651_s14 }
  0x1d   : > { %2281 = sst [smem:[#allocation33_spill]] %s2348_s16  ;;  %s50_s19 = ssub.s32 %s1647_s13, %s2348_s16 }
  0x1e   : > { %p1781_p3 = por %p2247_p2, %p61_p1  ;;  %p47_p4 = scmp.ge.s32.totalorder %s2350_s17, 2 }
  0x1f   : > { %p2246_p6 = scmp.lt.s32.totalorder %s1655_s15, 8  ;;  %s2244_s21 = sand.u32 1, %s1635_s10  }
  0x20   : > { %s2352_s17 = smov (%p47_p4, %s2350_s17), 0  ;;  %s1097_s22 = sshll.u32 %s1651_s14, 2 }
  0x21   : > { %2283 = sst [smem:[#allocation34_spill]] %s2352_s17  ;;  %s1794_s23 = ssub.s32 %s1651_s14, %s2352_s17 }
  0x22   : > { %s1798_s24 = sshll.u32 %s2244_s21, 3  ;;  %s51_s25 = sor.u32 %s50_s19, %s1794_s23 }
  0x23   : > { %p52_p8 = scmp.eq.s32.totalorder %s51_s25, 0  ;;  %s314_s26 = sadd.s32 %s1647_s13, %s1097_s22 }
  0x24   : > { %s1803_s16 = sshll.u32 %s314_s26, 7  ;;  %p1809_p9 = pnand %p2246_p6, %p1781_p3 }
  0x25   : > { %s1814_s17 = scalar_select %p52_p8, %s1635_s10, %s54_s18  }
  0x26   : > { %s2284_s8 = scalar_select %p1809_p9, 1, 0 }
  0x27   : > { %2285 = sst [smem:[#allocation35_spill]] %s1814_s17  ;;  %s1817_s11 = sand.u32 1, %s1655_s15  }
  0x28   : > { %s2286_s1 = sld [smem:[#allocation39_spill]]  ;;  %s329_s20 = scalar_lea.vmem [#allocation9], %s1798_s24 }
  0x29   : > { %s338_s22 = sshll.u32 %s329_s20, 4  ;;  %p1834_p12 = pneg %p1809_p9  ;;  %s1826_s22 = int_to_ptr.vmem [resolvable:$true] %s338_s22 }
  0x2b   : > { %s2287_s26 = scalar_select %p1834_p12, 1, 0 }
  0x2e   : > { %s1823_s19 = scalar_lea.hbm %s2286_s1, %s1803_s16  ;;  %s1312_s13 = scalar_lea.hbm %s2286_s1, 1024 }
  0x2f   : > { %s1307_s18 = scalar_lea.hbm %s1823_s19, 128  ;;  %p1313_p1 = scmp.lt.u32.totalorder %s1823_s19, %s2286_s1 }
  0x30   : > { %p1308_p11 = scmp.ne.s32.totalorder %s1823_s19, %s1307_s18  ;;  %p1314_p3 = scmp.lt.u32.totalorder %s1312_s13, %s1307_s18 }
  0x31   : > { %p1316_p8 = scmp.lt.u32.totalorder %s1307_s18, %s1823_s19 }
  0x32   : > { %p1310_p13 = pnand %p1834_p12, %p1308_p11  ;;  %p1315_p4 = por %p1314_p3, %p1313_p1 }
  0x34   : > { %p1311_p0 = pneg %p1310_p13  ;;  %p1317_p6 = por %p1316_p8, %p1315_p4 }
  0x36   : > { %p1318_p2 = pnand %p1317_p6, %p1311_p0 }
  0x38   : > { %1321 = shalt.err (!%p1318_p2)
}
  0x39   : > { %s1322_s25 = scalar_lea.vmem %s1826_s22, 128  ;;  %s1657_s5 = smov [#allocation9]  }
  0x3a   : > { %p1323_p11 = scmp.ne.s32.totalorder %s1826_s22, %s1322_s25  ;;  %s1327_s21 = sshll.u32 %s1657_s5, 4  ;;  %s1328_s21 = int_to_ptr.vmem [resolvable:$false] %s1327_s21 }
  0x3b   : > { %s1329_s17 = scalar_lea.vmem %s1328_s21, 256  ;;  %p1330_p5 = scmp.lt.s32.totalorder %s1826_s22, %s1328_s21 }
  0x3c   : > { %p1325_p13 = pnand %p1323_p11, %p1834_p12  ;;  %p1331_p10 = scmp.lt.s32.totalorder %s1329_s17, %s1322_s25 }
  0x3e   : > { %p1326_p7 = pneg %p1325_p13  ;;  %p1332_p1 = por %p1331_p10, %p1330_p5 }
  0x40   : > { %p1333_p3 = pnand %p1332_p1, %p1326_p7 }
  0x42   : > { %1336 = shalt.err (!%p1333_p3)
}
  0x43   : > { %s2288_s13 = scalar_lea.sflag [#allocation10], %s1817_s11  ;;  %p444_p2 = scmp.lt.s32.totalorder %s1655_s15, 9 }
  0x44   : > { %1168 = dma.hbm_to_vmem [thread:$0]  (!%p1809_p9), %s1823_s19, 128, %s1826_s22, %s2288_s13  }
  0x45   : > { %s2289_s3 = sld [smem:[#allocation40_spill]]  ;;  %p2290_p5 = scmp.ge.s32.totalorder %s1655_s15, 1 }
  0x46   : > { %s369_s21 = scalar_lea.vmem [#allocation12], %s1798_s24 }
  0x47   : > { %p1868_p6 = pnand %p2290_p5, %p444_p2  ;;  %s378_s17 = sshll.u32 %s369_s21, 4  ;;  %s379_s17 = int_to_ptr.vmem [resolvable:$true] %s378_s17 }
  0x49   : > { %s2291_s5 = scalar_select %p1868_p6, 1, 0 }
  0x4b   : > { %s1864_s25 = scalar_lea.hbm %s2289_s3, %s1803_s16  ;;  %2292 = sst [smem:[#allocation36_spill]] %s2291_s5 }
  0x4c   : > { %s1337_s19 = scalar_lea.hbm %s1864_s25, 128  ;;  %s1342_s18 = scalar_lea.hbm %s2289_s3, 1024 }
  0x4d   : > { %p1338_p7 = scmp.ne.s32.totalorder %s1864_s25, %s1337_s19  ;;  %p1343_p4 = scmp.lt.u32.totalorder %s1864_s25, %s2289_s3 }
  0x4e   : > { %p1344_p8 = scmp.lt.u32.totalorder %s1342_s18, %s1337_s19  ;;  %p1346_p13 = scmp.lt.u32.totalorder %s1337_s19, %s1864_s25 }
  0x4f   : > { %p1340_p10 = pnand %p1338_p7, %p1834_p12 }
  0x50   : > { %p1345_p11 = por %p1344_p8, %p1343_p4 }
  0x51   : > { %p1341_p0 = pneg %p1340_p10 }
  0x52   : > { %p1347_p1 = por %p1346_p13, %p1345_p11 }
  0x54   : > { %p1348_p3 = pnand %p1347_p1, %p1341_p0 }
  0x56   : > { %1351 = shalt.err (!%p1348_p3)
}
  0x57   : > { %s1352_s21 = scalar_lea.vmem %s379_s17, 128  ;;  %s1658_s1 = smov [#allocation12]  }
  0x58   : > { %p1353_p2 = scmp.ne.s32.totalorder %s379_s17, %s1352_s21  ;;  %s1357_s5 = sshll.u32 %s1658_s1, 4  ;;  %s1358_s5 = int_to_ptr.vmem [resolvable:$false] %s1357_s5 }
  0x59   : > { %s1359_s22 = scalar_lea.vmem %s1358_s5, 256  ;;  %p1360_p10 = scmp.lt.s32.totalorder %s379_s17, %s1358_s5 }
  0x5a   : > { %p1355_p5 = pnand %p1353_p2, %p1834_p12  ;;  %p1361_p6 = scmp.lt.s32.totalorder %s1359_s22, %s1352_s21 }
  0x5c   : > { %p1356_p7 = pneg %p1355_p5  ;;  %p1362_p9 = por %p1361_p6, %p1360_p10 }
  0x5e   : > { %p1363_p4 = pnand %p1362_p9, %p1356_p7 }
  0x60   : > { %1366 = shalt.err (!%p1363_p4)
}
  0x61   : > { %p2293_p8 = scmp.ne.s32.totalorder %s2284_s8, 0  ;;  %s2294_s12 = scalar_lea.sflag [#allocation13], %s1817_s11 }
  0x62   : > { %s1894_s1 = sadd.s32 4294967295, %s1655_s15   ;;  %s1093_s5 = sadd.s32 4294967294, %s1655_s15  }
  0x63   : > { %1174 = dma.hbm_to_vmem [thread:$0]  (!%p2293_p8), %s1864_s25, 128, %s379_s17, %s2294_s12  }
  0x64   : > { %p68_p9 = scmp.eq.s32.totalorder %s1894_s1, 0  ;;  %s164_s19 = sadd.s32 1, %s1623_s29 }
  0x65   : > { %p171_p6 = scmp.ne.s32.totalorder %s1623_s29, %s1619_s28  ;;  %p2295_p0 = scmp.ne.s32.totalorder %s1631_s9, %s1627_s30 }
  0x66   : > { %p177_p13 = scmp.ne.s32.totalorder %s1619_s28, %s1615_s27  ;;  %p2297_p1 = scmp.eq.s32.totalorder %s1794_s23, 0 }
  0x67   : > { %p1904_p11 = por %p68_p9, %p2295_p0  ;;  %p2299_p3 = scmp.eq.s32.totalorder %s1655_s15, 0 }
  0x68   : > { %s1913_s18 = scalar_select %p2297_p1, %s1623_s29, %s164_s19  }
  0x69   : > { %s2296_s13 = scalar_select %p1904_p11, 1, 0 }
  0x6a   : > { %2298 = sst [smem:[#allocation37_spill]] %s1913_s18  ;;  %p173_p2 = por %p171_p6, %p2299_p3 }
  0x6b   : > { %p1917_p5 = por %p177_p13, %p68_p9  ;;  %p279_p7 = scmp.eq.s32.totalorder %s1894_s1, 7 }
  0x6c   : > { %p285_p10 = scmp.eq.s32.totalorder %s1093_s5, 7  ;;  %s387_s17 = sand.u32 1, %s1623_s29  }
  0x6d   : > { %s2300_s25 = scalar_select %p1917_p5, 1, 0 }
  0x6e   : > { %s1924_s20 = sshll.u32 %s1651_s14, 7  ;;  %p1926_p4 = por %p279_p7, %p171_p6 }
  0x6f   : > { %p1930_p0 = por %p285_p10, %p177_p13  ;;  %s1934_s21 = sshll.u32 %s387_s17, 3 }
  0x70   : > { %s2301_s30 = scalar_select %p1926_p4, 1, 0 }
  0x71   : > { %s2302_s23 = scalar_select %p1930_p0, 1, 0 }
  0x72   : > { %p2304_p9 = scmp.lt.s32.totalorder %s1655_s15, 8  ;;  %s2306_s6 = sld [smem:[#allocation42_spill]] }
  0x73   : > { %2303 = sst [smem:[#allocation38_spill]] %s2302_s23  ;;  %s414_s3 = scalar_lea.vmem [#allocation15], %s1934_s21 }
  0x74   : > { %p1938_p1 = pnand %p2304_p9, %p173_p2  ;;  %s421_s14 = sshll.u32 %s414_s3, 4  ;;  %s1949_s14 = int_to_ptr.vmem [resolvable:$true] %s421_s14 }
  0x76   : > { %s2305_s22 = scalar_select %p1938_p1, 1, 0 }
  0x77   : > { %p1956_p13 = pneg %p1938_p1 }
  0x78   : > { %s1946_s19 = scalar_lea.hbm %s2306_s6, %s1924_s20  ;;  %s1372_s23 = scalar_lea.hbm %s2306_s6, 256 }
  0x79   : > { %s1367_s18 = scalar_lea.hbm %s1946_s19, 128  ;;  %p1373_p7 = scmp.lt.u32.totalorder %s1946_s19, %s2306_s6 }
  0x7a   : > { %p1368_p6 = scmp.ne.s32.totalorder %s1946_s19, %s1367_s18  ;;  %p1374_p10 = scmp.lt.u32.totalorder %s1372_s23, %s1367_s18 }
  0x7b   : > { %s2307_s29 = scalar_select %p1956_p13, 1, 0 }
  0x7c   : > { %p1370_p3 = pnand %p1956_p13, %p1368_p6  ;;  %p1375_p9 = por %p1374_p10, %p1373_p7 }
  0x7d   : > { %p1376_p0 = scmp.lt.u32.totalorder %s1367_s18, %s1946_s19 }
  0x7e   : > { %p1371_p2 = pneg %p1370_p3 }
  0x7f   : > { %p1377_p4 = por %p1376_p0, %p1375_p9 }
  0x81   : > { %p1378_p5 = pnand %p1377_p4, %p1371_p2 }
  0x83   : > { %1381 = shalt.err (!%p1378_p5)
}
  0x84   : > { %s1382_s17 = scalar_lea.vmem %s1949_s14, 128  ;;  %s1659_s12 = smov [#allocation15]  }
  0x85   : > { %p1383_p6 = scmp.ne.s32.totalorder %s1949_s14, %s1382_s17  ;;  %s1387_s5 = sshll.u32 %s1659_s12, 4  ;;  %s1388_s5 = int_to_ptr.vmem [resolvable:$false] %s1387_s5 }
  0x86   : > { %s1389_s27 = scalar_lea.vmem %s1388_s5, 256  ;;  %p1390_p8 = scmp.lt.s32.totalorder %s1949_s14, %s1388_s5 }
  0x87   : > { %p1385_p3 = pnand %p1383_p6, %p1956_p13  ;;  %p1391_p12 = scmp.lt.s32.totalorder %s1389_s27, %s1382_s17 }
  0x89   : > { %p1386_p11 = pneg %p1385_p3  ;;  %p1392_p7 = por %p1391_p12, %p1390_p8 }
  0x8b   : > { %p1393_p10 = pnand %p1392_p7, %p1386_p11 }
  0x8d   : > { %1396 = shalt.err (!%p1393_p10)
}
  0x8e   : > { %s2308_s18 = scalar_lea.sflag [#allocation16], %s1817_s11  ;;  %s1985_s12 = scalar_lea.hbm %s2232_s0, %s1803_s16 }
  0x8f   : > { %1180 = dma.hbm_to_vmem [thread:$0]  (!%p1938_p1), %s1946_s19, 128, %s1949_s14, %s2308_s18  }
  0x90   : > { %s309_s17 = scalar_lea.vmem [#allocation6], %s1798_s24  ;;  %s2309_s27 = sand.u32 1, %s1635_s10  }
  0x91   : > { %s318_s5 = sshll.u32 %s309_s17, 4  ;;  %s306_s6 = scalar_lea.sflag [#allocation7], %s2309_s27  ;;  %s319_s5 = int_to_ptr.vmem [resolvable:$true] %s318_s5 }
  0x92   : > { %s1397_s15 = scalar_lea.hbm %s1985_s12, 128  ;;  %p2310_p8 = scmp.ne.s32.totalorder %s2287_s26, 0 }
  0x93   : > { %p1398_p12 = scmp.ne.s32.totalorder %s1985_s12, %s1397_s15  ;;  %s1402_s18 = scalar_lea.hbm %s2232_s0, 1024 }
  0x94   : > { %p1403_p4 = scmp.lt.u32.totalorder %s1985_s12, %s2232_s0  ;;  %p1404_p0 = scmp.lt.u32.totalorder %s1402_s18, %s1397_s15 }
  0x95   : > { %p1400_p11 = pnand %p1398_p12, %p2310_p8  ;;  %p1406_p9 = scmp.lt.u32.totalorder %s1397_s15, %s1985_s12 }
  0x96   : > { %p1405_p2 = por %p1404_p0, %p1403_p4 }
  0x97   : > { %p1401_p5 = pneg %p1400_p11 }
  0x98   : > { %p1407_p6 = por %p1406_p9, %p1405_p2 }
  0x9a   : > { %p1408_p3 = pnand %p1407_p6, %p1401_p5 }
  0x9c   : > { %1411 = shalt.err (!%p1408_p3)
}
  0x9d   : > { %s1412_s17 = scalar_lea.vmem %s319_s5, 128  ;;  %s1660_s27 = smov [#allocation6]  }
  0x9e   : > { %p1413_p7 = scmp.ne.s32.totalorder %s319_s5, %s1412_s17  ;;  %s1417_s10 = sshll.u32 %s1660_s27, 4  ;;  %s1418_s10 = int_to_ptr.vmem [resolvable:$false] %s1417_s10 }
  0x9f   : > { %s1419_s14 = scalar_lea.vmem %s1418_s10, 256  ;;  %p1420_p11 = scmp.lt.s32.totalorder %s319_s5, %s1418_s10 }
  0xa0   : > { %p1415_p10 = pnand %p1413_p7, %p2310_p8  ;;  %p1421_p1 = scmp.lt.s32.totalorder %s1419_s14, %s1412_s17 }
  0xa2   : > { %p1416_p12 = pneg %p1415_p10  ;;  %p1422_p13 = por %p1421_p1, %p1420_p11 }
  0xa4   : > { %p1423_p0 = pnand %p1422_p13, %p1416_p12 }
  0xa6   : > { %1426 = shalt.err (!%p1423_p0)
}
  0xa7   : > { %p2311_p4 = scmp.ne.s32.totalorder %s2284_s8, 0  ;;  %s2011_s18 = scalar_lea.hbm %s2234_s2, %s1803_s16 }
  0xa8   : > { %s349_s10 = scalar_lea.vmem [#allocation11], %s1798_s24  ;;  %s1427_s3 = scalar_lea.hbm %s2011_s18, 128 }
  0xa9   : > { %1165 = dma.hbm_to_vmem [thread:$0]  (!%p2311_p4), %s1985_s12, 128, %s319_s5, %s306_s6  }
  0xaa   : > { %s358_s23 = sshll.u32 %s349_s10, 4  ;;  %p1428_p1 = scmp.ne.s32.totalorder %s2011_s18, %s1427_s3  ;;  %s359_s23 = int_to_ptr.vmem [resolvable:$true] %s358_s23 }
  0xab   : > { %s1432_s6 = scalar_lea.hbm %s2234_s2, 1024  ;;  %p1433_p2 = scmp.lt.u32.totalorder %s2011_s18, %s2234_s2 }
  0xac   : > { %p1430_p13 = pnand %p1428_p1, %p2310_p8  ;;  %p1434_p9 = scmp.lt.u32.totalorder %s1432_s6, %s1427_s3 }
  0xad   : > { %p1436_p3 = scmp.lt.u32.totalorder %s1427_s3, %s2011_s18 }
  0xae   : > { %p1431_p5 = pneg %p1430_p13  ;;  %p1435_p6 = por %p1434_p9, %p1433_p2 }
  0xb0   : > { %p1437_p7 = por %p1436_p3, %p1435_p6 }
  0xb2   : > { %p1438_p10 = pnand %p1437_p7, %p1431_p5 }
  0xb4   : > { %1441 = shalt.err (!%p1438_p10)
}
  0xb5   : > { %s1442_s16 = scalar_lea.vmem %s359_s23, 128  ;;  %s1661_s24 = smov [#allocation11]  }
  0xb6   : > { %p1443_p12 = scmp.ne.s32.totalorder %s359_s23, %s1442_s16  ;;  %s1447_s14 = sshll.u32 %s1661_s24, 4  ;;  %s1448_s14 = int_to_ptr.vmem [resolvable:$false] %s1447_s14 }
  0xb7   : > { %s1449_s15 = scalar_lea.vmem %s1448_s14, 256  ;;  %p1450_p1 = scmp.lt.s32.totalorder %s359_s23, %s1448_s14 }
  0xb8   : > { %p1445_p11 = pnand %p1443_p12, %p2310_p8  ;;  %p1451_p13 = scmp.lt.s32.totalorder %s1449_s15, %s1442_s16 }
  0xba   : > { %p1446_p0 = pneg %p1445_p11  ;;  %p1452_p4 = por %p1451_p13, %p1450_p1 }
  0xbc   : > { %p1453_p2 = pnand %p1452_p4, %p1446_p0 }
  0xbe   : > { %1456 = shalt.err (!%p1453_p2)
}
  0xbf   : > { %p2312_p9 = scmp.ne.s32.totalorder %s2284_s8, 0  ;;  %s2313_s19 = scalar_lea.sflag [#allocation10], %s1817_s11 }
  0xc0   : > { %s2037_s3 = scalar_lea.hbm %s2236_s4, %s1924_s20  ;;  %s389_s17 = scalar_lea.vmem [#allocation14], %s1934_s21 }
  0xc1   : > { %1171 = dma.hbm_to_vmem [thread:$0]  (!%p2312_p9), %s2011_s18, 128, %s359_s23, %s2313_s19  }
  0xc2   : > { %s396_s27 = sshll.u32 %s389_s17, 4  ;;  %s1457_s8 = scalar_lea.hbm %s2037_s3, 128  ;;  %s397_s27 = int_to_ptr.vmem [resolvable:$true] %s396_s27 }
  0xc3   : > { %p1458_p8 = scmp.ne.s32.totalorder %s2037_s3, %s1457_s8  ;;  %p2314_p4 = scmp.ne.s32.totalorder %s2307_s29, 0 }
  0xc4   : > { %s1462_s18 = scalar_lea.hbm %s2236_s4, 256  ;;  %p1463_p3 = scmp.lt.u32.totalorder %s2037_s3, %s2236_s4 }
  0xc5   : > { %p1460_p5 = pnand %p1458_p8, %p2314_p4  ;;  %p1464_p7 = scmp.lt.u32.totalorder %s1462_s18, %s1457_s8 }
  0xc6   : > { %p1466_p12 = scmp.lt.u32.totalorder %s1457_s8, %s2037_s3 }
  0xc7   : > { %p1461_p6 = pneg %p1460_p5  ;;  %p1465_p10 = por %p1464_p7, %p1463_p3 }
  0xc9   : > { %p1467_p11 = por %p1466_p12, %p1465_p10 }
  0xcb   : > { %p1468_p0 = pnand %p1467_p11, %p1461_p6 }
  0xcd   : > { %1471 = shalt.err (!%p1468_p0)
}
  0xce   : > { %s1472_s16 = scalar_lea.vmem %s397_s27, 128  ;;  %s1662_s24 = smov [#allocation14]  }
  0xcf   : > { %p1473_p1 = scmp.ne.s32.totalorder %s397_s27, %s1472_s16  ;;  %s1477_s14 = sshll.u32 %s1662_s24, 4  ;;  %s1478_s14 = int_to_ptr.vmem [resolvable:$false] %s1477_s14 }
  0xd0   : > { %s1479_s15 = scalar_lea.vmem %s1478_s14, 256  ;;  %p1480_p9 = scmp.lt.s32.totalorder %s397_s27, %s1478_s14 }
  0xd1   : > { %p1475_p13 = pnand %p1473_p1, %p2314_p4  ;;  %p1481_p8 = scmp.lt.s32.totalorder %s1479_s15, %s1472_s16 }
  0xd3   : > { %p1476_p2 = pneg %p1475_p13  ;;  %p1482_p5 = por %p1481_p8, %p1480_p9 }
  0xd5   : > { %p1483_p3 = pnand %p1482_p5, %p1476_p2 }
  0xd7   : > { %1486 = shalt.err (!%p1483_p3)
}
  0xd8   : > { %p2315_p7 = scmp.ne.s32.totalorder %s2305_s22, 0  ;;  %s2316_s19 = scalar_lea.sflag [#allocation13], %s1817_s11 }
  0xd9   : > { %s2063_s17 = scalar_lea.hbm %s2239_s7, %s1924_s20  ;;  %s432_s8 = scalar_lea.vmem [#allocation17], %s1934_s21 }
  0xda   : > { %1177 = dma.hbm_to_vmem [thread:$0]  (!%p2315_p7), %s2037_s3, 128, %s397_s27, %s2316_s19  }
  0xdb   : > { %s439_s6 = sshll.u32 %s432_s8, 4  ;;  %s1487_s12 = scalar_lea.hbm %s2063_s17, 128  ;;  %s440_s6 = int_to_ptr.vmem [resolvable:$true] %s439_s6 }
  0xdc   : > { %p1488_p6 = scmp.ne.s32.totalorder %s2063_s17, %s1487_s12  ;;  %s1492_s3 = scalar_lea.hbm %s2239_s7, 256 }
  0xdd   : > { %p1493_p11 = scmp.lt.u32.totalorder %s2063_s17, %s2239_s7  ;;  %p1494_p0 = scmp.lt.u32.totalorder %s1492_s3, %s1487_s12 }
  0xde   : > { %p1490_p10 = pnand %p1488_p6, %p2314_p4  ;;  %p1496_p13 = scmp.lt.u32.totalorder %s1487_s12, %s2063_s17 }
  0xdf   : > { %p1495_p1 = por %p1494_p0, %p1493_p11 }
  0xe0   : > { %p1491_p12 = pneg %p1490_p10 }
  0xe1   : > { %p1497_p2 = por %p1496_p13, %p1495_p1 }
  0xe3   : > { %p1498_p9 = pnand %p1497_p2, %p1491_p12 }
  0xe5   : > { %1501 = shalt.err (!%p1498_p9)
}
  0xe6   : > { %s1502_s20 = scalar_lea.vmem %s440_s6, 128  ;;  %s1663_s21 = smov [#allocation17]  }
  0xe7   : > { %p1503_p8 = scmp.ne.s32.totalorder %s440_s6, %s1502_s20  ;;  %s1507_s16 = sshll.u32 %s1663_s21, 4  ;;  %s1508_s16 = int_to_ptr.vmem [resolvable:$false] %s1507_s16 }
  0xe8   : > { %s1509_s24 = scalar_lea.vmem %s1508_s16, 256  ;;  %p1510_p6 = scmp.lt.s32.totalorder %s440_s6, %s1508_s16 }
  0xe9   : > { %p1505_p5 = pnand %p1503_p8, %p2314_p4  ;;  %p1511_p10 = scmp.lt.s32.totalorder %s1509_s24, %s1502_s20 }
  0xeb   : > { %p1506_p3 = pneg %p1505_p5  ;;  %p1512_p7 = por %p1511_p10, %p1510_p6 }
  0xed   : > { %p1513_p0 = pnand %p1512_p7, %p1506_p3 }
  0xef   : > { %1516 = shalt.err (!%p1513_p0)
}
  0xf0   : > { %p2317_p11 = scmp.ne.s32.totalorder %s2305_s22, 0  ;;  %s2318_s14 = scalar_lea.sflag [#allocation16], %s1817_s11 }
  0xf1   : > { %s2319_s15 = sld [smem:[#allocation36_spill]] }
  0xf2   : > { %1183 = dma.hbm_to_vmem [thread:$0]  (!%p2317_p11), %s2063_s17, 128, %s440_s6, %s2318_s14  }
  0xf7   : > { %p2320_p12 = scmp.ne.s32.totalorder %s2319_s15, 0 }
  0xf8   : > { %s450_s29 = sand.u32 (!%p2320_p12), 1, %s1631_s9   ;;  %p2321_p4 = scmp.ne.s32.totalorder (!%p2320_p12), %s2296_s13, 0 }
  0xf9   : > { %448 = sbr.rel (%p2320_p12) target bundleno = 1003 (0x3eb), region = 52  ;;  %s2088_s19 = sshll.u32 (!%p2320_p12), %s450_s29, 3 }
  0xfa   : > { %s451_s26 = scalar_lea.sflag (!%p2320_p12), [#allocation7], %s450_s29  ;;  %s454_s10 = scalar_lea.vmem (!%p2320_p12), [#allocation6], %s2088_s19 }
 0x100   : > { %1590 = dma.done.wait (%p2321_p4), %s451_s26, 128  }
 0x101   : > { %1592 = vsyncadd (%p2321_p4), %s451_s26, 4294967168  ;;  %s459_s11 = sand.u32 1, %s1894_s1   ;;  %s463_s17 = scalar_lea.vmem [#allocation9], %s2088_s19 }
 0x102   : > { %s460_s22 = scalar_lea.sflag [#allocation10], %s459_s11 }
 0x103   : > { %1594 = dma.done.wait (%p2321_p4), %s460_s22, 256  }
 0x104   : > { %1596 = vsyncadd (%p2321_p4), %s460_s22, 4294967040  ;;  %s472_s8 = scalar_lea.vmem [#allocation11], %s2088_s19  ;;  %s478_s6 = scalar_lea.sflag [#allocation13], %s459_s11 }
 0x105   : > { %s481_s12 = scalar_lea.vmem [#allocation12], %s2088_s19 }
 0x106   : > { %1598 = dma.done.wait (%p2321_p4), %s478_s6, 128  }
 0x107   : > { %1600 = vsyncadd (%p2321_p4), %s478_s6, 4294967168  ;;  %s488_s1 = sand.u32 1, %s1619_s28   ;;  %p2322_p7 = scmp.ne.s32.totalorder %s2300_s25, 0 }
 0x108   : > { %s2110_s18 = sshll.u32 %s488_s1, 3 }
 0x109   : > { %s490_s23 = scalar_lea.vmem [#allocation14], %s2110_s18 }
 0x10a   : > { %1602 = dma.done.wait (%p2322_p7), %s478_s6, 128  }
 0x10b   : > { %1604 = vsyncadd (%p2322_p7), %s478_s6, 4294967168  ;;  %s496_s3 = scalar_lea.sflag [#allocation16], %s459_s11  ;;  %s499_s27 = scalar_lea.vmem [#allocation15], %s2110_s18 }
 0x10c   : > { %1606 = dma.done.wait (%p2322_p7), %s496_s3, 256  }
 0x10d   : > { %1608 = vsyncadd (%p2322_p7), %s496_s3, 4294967040  ;;  %s2323_s13 = sld [smem:[#allocation29_spill]]  ;;  %s2324_s16 = sld [smem:[#allocation41_spill]] }
 0x10e   : > { %s508_s14 = scalar_lea.vmem [#allocation17], %s2110_s18  ;;  %s574_s15 = scalar_lea.vmem [#allocation18], %s2110_s18 }
 0x10f   : > { %s2325_s29 = sld [smem:[#allocation28_spill]] }
 0x113   : > { %p575_p1 = scmp.lt.s32.totalorder %s2323_s13, 1 }
 0x115   : > { %s2354_s13 = smov (!%p575_p1, %s2323_s13), 1  ;;  %p1124_p13 = scmp.ne.s32.totalorder %s2325_s29, 0 }
 0x116   : > { %s1123_s5 = sshll.u32 %s2354_s13, 3  ;;  %vm583_vm0 = vcmask (!%p1124_p13), 7168   ;;  %v1664_v0 = vmov (!%p1124_p13), -inf   ;;  %v1665_v1 = vmov (!%p1124_p13), 0.0  }
 0x117   : > { %s2127_s24 = scalar_lea.vmem %s2324_s16, %s1123_s5  ;;  %582 = sbr.rel (%p1124_p13) target bundleno = 286 (0x11e), region = 84  ;;  %584 = vst.msk [vmem:[#allocation2] sm:$0xff] (!%p1124_p13), %vm583_vm0, %v1664_v0  ;;  %585 = vst.msk [vmem:[#allocation2 + $0x8] sm:$0xff] (!%p1124_p13), %vm583_vm0, %v1664_v0 }
 0x118   : > { %586 = vst.msk [vmem:[#allocation2 + $0x10] sm:$0xff] (!%p1124_p13), %vm583_vm0, %v1664_v0  ;;  %587 = vst.msk [vmem:[#allocation3] sm:$0xff] (!%p1124_p13), %vm583_vm0, %v1665_v1 }
 0x119   : > { %588 = vst.msk [vmem:[#allocation3 + $0x8] sm:$0xff] (!%p1124_p13), %vm583_vm0, %v1665_v1  ;;  %589 = vst.msk [vmem:[#allocation3 + $0x10] sm:$0xff] (!%p1124_p13), %vm583_vm0, %v1665_v1 }
 0x11a   : > { %590 = vst.msk [vmem:[#allocation4] sm:$0xff] (!%p1124_p13), %vm583_vm0, %v1665_v1  ;;  %591 = vst.msk [vmem:[#allocation4 + $0x8] sm:$0xff] (!%p1124_p13), %vm583_vm0, %v1665_v1 }
 0x11b   : > { %592 = vst.msk [vmem:[#allocation4 + $0x10] sm:$0xff] (!%p1124_p13), %vm583_vm0, %v1665_v1  ;;  %593 = vst.msk [vmem:[#allocation5] sm:$0xff] (!%p1124_p13), %vm583_vm0, %v1665_v1 }
 0x11e PF: > { %v601_v2 = vld [vmem:[%s454_s10] sm:$0xff]  ;;  %v630_v4 = vld [vmem:[%s463_s17] sm:$0xff]  ;;  %v1666_v5 = vmov 0   ;;  %vm599_vm1 = vcmask 7168   ;;  %s2326_s25 = sld [smem:[#allocation28_spill]] }
 0x11f   : > { %v662_v3 = vld [vmem:[%s472_s8] sm:$0xff]  ;;  %603 = vmax.xlane.f32.xlu0 %v601_v2  ;;  %1281 = vset.pattern.permute.xlu1 %v1666_v5  ;;  %v602_v6 = vld [vmem:[#allocation2] sm:$0xff]  ;;  %v632_v12 = vld [vmem:[#allocation2 + $0x8] sm:$0xff] }
 0x120   : > { %665 = vmax.xlane.f32.xlu1 %v662_v3  ;;  %1282 = vset.pattern.permute.xlu0 %v1666_v5  ;;  %v664_v7 = vld [vmem:[#allocation2 + $0x10] sm:$0xff]  ;;  %v594_v18 = vld [vmem:[%s481_s12] sm:$0xff]  ;;  %v609_v47 = vld [vmem:[#allocation3] sm:$0xff] }
 0x121   : > { %v624_v19 = vmul.f32 %v601_v2, %v594_v18  ;;  %v656_v20 = vmul.f32 %v630_v4, %v594_v18  ;;  %v688_v33 = vmul.f32 %v662_v3, %v594_v18  ;;  %v623_v37 = vld [vmem:[#allocation4] sm:$0xff]  ;;  %v655_v40 = vld [vmem:[#allocation4 + $0x8] sm:$0xff]  ;;  %v640_v52 = vld [vmem:[#allocation3 + $0x8] sm:$0xff] }
 0x122   : > { %v595_v34 = vld [vmem:[#allocation5] sm:$0xff]  ;;  %v687_v61 = vld [vmem:[#allocation4 + $0x10] sm:$0xff] }
 0x123   : > { %633 = vmax.xlane.f32.xlu0 %v630_v4  ;;  %v672_v56 = vld [vmem:[#allocation3 + $0x10] sm:$0xff] }
 0x124   : > { %p1125_p2 = scmp.ne.s32.totalorder %s2326_s25, 3 }
 0x125   : > { %v753_v0 = vld [vmem:[%s490_s23] sm:$0xff] (!%p1125_p2)  ;;  %v755_v1 = vld [vmem:[%s499_s27] sm:$0xff] (!%p1125_p2)  ;;  %vm765_vm2 = vcmask (!%p1125_p2), 261120  }
 0x1ac   : > { %v604_v8 = vpop.xlane.xlu0 %603 }
 0x1ad   : > { %v666_v9 = vpop.xlane.xlu1 %665  ;;  %v605_v10 = vmax.f32 %v602_v6, %v604_v8 }
 0x1ae   : > { %v667_v11 = vmax.f32 %v664_v7, %v666_v9  ;;  %v756_v9 = vld [vmem:[%s508_s14] sm:$0xff] (!%p1125_p2) }
 0x1af   : > { %v606_v13 = vsub.f32 %v602_v6, %v605_v10  ;;  %629 = vst.msk [vmem:[#allocation2] sm:$0xff] %vm599_vm1, %v605_v10  ;;  %613 = vperm.xlu1 %1281, %v605_v10  }
 0x1b0   : > { %v668_v14 = vsub.f32 %v664_v7, %v667_v11  ;;  %693 = vst.msk [vmem:[#allocation2 + $0x10] sm:$0xff] %vm599_vm1, %v667_v11  ;;  %v634_v15 = vpop.xlane.xlu0 %633 }
 0x1b1   : > { %v635_v16 = vmax.f32 %v632_v12, %v634_v15  ;;  %v607_v43 = vmul.f32 1.442695, %v606_v13 }
 0x1b2   : > { %v669_v45 = vmul.f32 1.442695, %v668_v14 }
 0x1b3   : > { %v636_v17 = vsub.f32 %v632_v12, %v635_v16  ;;  %661 = vst.msk [vmem:[#allocation2 + $0x8] sm:$0xff] %vm599_vm1, %v635_v16  ;;  %676 = vperm.xlu1 %1281, %v667_v11   ;;  %644 = vperm.xlu0 %1282, %v635_v16   ;;  %v759_v11 = vmul.f32 (!%p1125_p2), 1.442695, %v756_v9  ;;  %v762_v12 = vmul.f32 (!%p1125_p2), %v753_v0, %v753_v0 }
 0x1b5   : > { %v637_v44 = vmul.f32 1.442695, %v636_v17 }
 0x1b6   : > { %v699_v16 = vld [vmem:[#allocation2] sm:$0xff] (!%p1125_p2) }
 0x1d7   : > { %596 = vadd.xlane.f32.xlu1 %v594_v18 }
 0x1db   : > { %625 = vadd.xlane.f32.xlu1 %v624_v19 }
 0x1df   : > { %657 = vadd.xlane.f32.xlu1 %v656_v20 }
 0x22e   : > { %v614_v21 = vpop.permute.xlu1 %613 }
 0x22f   : > { %v616_v22 = vsub.f32 %v601_v2, %v614_v21  ;;  %v754_v2 = vld [vmem:[%s2127_s24] sm:$0xff] (!%p1125_p2) }
 0x230   : > { %v761_v13 = vadd.f32 (!%p1125_p2), 1.0, %v754_v2 }
 0x231   : > { %v617_v23 = vmul.f32 1.442695, %v616_v22 }
 0x232   : > { %v677_v24 = vpop.permute.xlu1 %676  ;;  %v645_v25 = vpop.permute.xlu0 %644  ;;  %v763_v14 = vsub.f32 (!%p1125_p2), %v761_v13, %v762_v12 }
 0x233   : > { %1283 = vpow2.f32 %v617_v23  ;;  %v647_v26 = vsub.f32 %v630_v4, %v645_v25  ;;  %v679_v27 = vsub.f32 %v662_v3, %v677_v24  ;;  %v776_v3 = vsub.f32 (!%p1125_p2), %v753_v0, %v755_v1  ;;  %v735_v23 = vld [vmem:[#allocation2 + $0x10] sm:$0xff] (!%p1125_p2) }
 0x234   : > { %v757_v4 = vmul.f32 (!%p1125_p2), 1.442695, %v754_v2 }
 0x235   : > { %v648_v28 = vmul.f32 1.442695, %v647_v26  ;;  %v680_v29 = vmul.f32 1.442695, %v679_v27  ;;  %v777_v7 = vmul.f32 (!%p1125_p2), %v776_v3, %v776_v3  ;;  %v717_v27 = vld [vmem:[#allocation2 + $0x8] sm:$0xff] (!%p1125_p2) }
 0x237   : > { %1285 = vpow2.f32 %v648_v28  ;;  %v778_v10 = vsel (!%p1125_p2), %vm765_vm2, %v777_v7, 0.0 }
 0x238   : > { %1287 = vpow2.f32 %v680_v29 }
 0x239   : > { %1289 = vpow2.f32 %v607_v43 }
 0x23a   : > { %1291 = vpow2.f32 %v637_v44 }
 0x23b   : > { %1293 = vpow2.f32 %v669_v45 }
 0x23d   : > { %v1284_v30 = vpop.eup %1283 }
 0x23e   : > { %619 = vadd.xlane.f32.xlu0 %v1284_v30 }
 0x241   : > { %v1286_v31 = vpop.eup %1285 }
 0x242   : > { %650 = vadd.xlane.f32.xlu1 %v1286_v31  ;;  %v1288_v32 = vpop.eup %1287  ;;  %779 = vadd.xlane.f32.xlu0 (!%p1125_p2), %v778_v10 }
 0x243   : > { %v1290_v46 = vpop.eup %1289 }
 0x244   : > { %v610_v48 = vmul.f32 %v1290_v46, %v609_v47  ;;  %v1292_v50 = vpop.eup %1291 }
 0x245   : > { %v641_v53 = vmul.f32 %v1292_v50, %v640_v52  ;;  %v1294_v54 = vpop.eup %1293 }
 0x246   : > { %682 = vadd.xlane.f32.xlu1 %v1288_v32  ;;  %v673_v58 = vmul.f32 %v1294_v54, %v672_v56 }
 0x24a   : > { %689 = vadd.xlane.f32.xlu1 %v688_v33 }
 0x264   : > { %v597_v35 = vpop.xlane.xlu1 %596 }
 0x265   : > { %v598_v36 = vadd.f32 %v597_v35, %v595_v34 }
 0x267   : > { %600 = vst.msk [vmem:[#allocation5] sm:$0xff] %vm599_vm1, %v598_v36 }
 0x268   : > { %v626_v38 = vpop.xlane.xlu1 %625 }
 0x269   : > { %v627_v39 = vadd.f32 %v626_v38, %v623_v37 }
 0x26b   : > { %628 = vst.msk [vmem:[#allocation4] sm:$0xff] %vm599_vm1, %v627_v39 }
 0x26c   : > { %v658_v41 = vpop.xlane.xlu1 %657 }
 0x26d   : > { %v659_v42 = vadd.f32 %v658_v41, %v655_v40 }
 0x26e   : > { %v698_v22 = vld [vmem:[#allocation5] sm:$0xff] (!%p1125_p2) }
 0x26f   : > { %660 = vst.msk [vmem:[#allocation4 + $0x8] sm:$0xff] %vm599_vm1, %v659_v42 }
 0x272   : > { %v704_v29 = vld [vmem:[#allocation4] sm:$0xff] (!%p1125_p2) }
 0x276   : > { %v722_v39 = vld [vmem:[#allocation4 + $0x8] sm:$0xff] (!%p1125_p2) }
 0x2cb   : > { %v620_v49 = vpop.xlane.xlu0 %619 }
 0x2cc   : > { %v621_v51 = vadd.f32 %v620_v49, %v610_v48 }
 0x2ce   : > { %622 = vst.msk [vmem:[#allocation3] sm:$0xff] %vm599_vm1, %v621_v51 }
 0x2cf   : > { %v651_v55 = vpop.xlane.xlu1 %650  ;;  %v780_v54 = vpop.xlane.xlu0 (!%p1125_p2), %779 }
 0x2d0   : > { %v652_v57 = vadd.f32 %v651_v55, %v641_v53  ;;  %v781_v56 = vrot.slane (!%p1125_p2), %v780_v54, 4 }
 0x2d2   : > { %653 = vst.msk [vmem:[#allocation3 + $0x8] sm:$0xff] %vm599_vm1, %v652_v57 }
 0x2d3   : > { %v683_v59 = vpop.xlane.xlu1 %682 }
 0x2d4   : > { %v684_v60 = vadd.f32 %v683_v59, %v673_v58  ;;  %697 = sbr.rel (%p1125_p2) target bundleno = 976 (0x3d0), region = 88 }
 0x2d5   : > { %v700_v5 = vld [vmem:[#allocation3] sm:$0xff] (!%p1125_p2) }
 0x2d6   : > { %685 = vst.msk [vmem:[#allocation3 + $0x10] sm:$0xff] %vm599_vm1, %v684_v60  ;;  %1295 = vlog2.f32 (!%p1125_p2), %v700_v5 }
 0x2d7   : > { %v690_v62 = vpop.xlane.xlu1 %689  ;;  %1297 = vpow2.f32 (!%p1125_p2), %v757_v4 }
 0x2d8   : > { %v691_v63 = vadd.f32 %v690_v62, %v687_v61  ;;  %v782_v62 = vadd.f32 (!%p1125_p2), %v781_v56, %v780_v54 }
 0x2d9   : > { %v718_v8 = vld [vmem:[#allocation3 + $0x8] sm:$0xff] (!%p1125_p2) }
 0x2da   : > { %692 = vst.msk [vmem:[#allocation4 + $0x10] sm:$0xff] %vm599_vm1, %v691_v63 }
 0x2dd   : > { %v736_v6 = vld [vmem:[#allocation3 + $0x10] sm:$0xff] }
 0x2de   : > { %1299 = vlog2.f32 %v736_v6 }
 0x2df   : > { %1301 = vlog2.f32 %v718_v8  ;;  %v783_v8 = vrot.slane %v782_v62, 2 }
 0x2e0   : > { %1303 = vpow2.f32 %v759_v11  ;;  %v1296_v15 = vpop.eup %1295 }
 0x2e1   : > { %v1298_v17 = vpop.eup %1297  ;;  %v702_v18 = vmul.f32 0.6931472, %v1296_v15  ;;  %v740_v34 = vld [vmem:[#allocation4 + $0x10] sm:$0xff] }
 0x2e2   : > { %v788_v20 = vsel %vm765_vm2, %v1298_v17, 0.0  ;;  %v764_v21 = vsub.f32 %v763_v14, %v1298_v17 }
 0x2e3   : > { %789 = vadd.xlane.f32.xlu1 %v788_v20  ;;  %v703_v25 = vadd.f32 %v702_v18, %v699_v16 }
 0x2e4   : > { %v766_v28 = vsel %vm765_vm2, %v764_v21, 0.0 }
 0x2e5   : > { %v705_v32 = vmul.f32 %v703_v25, %v698_v22 }
 0x2e7   : > { %767 = vadd.xlane.f32.xlu1 %v766_v28  ;;  %v706_v37 = vsub.f32 %v704_v29, %v705_v32 }
 0x2e8   : > { %v1300_v19 = vpop.eup %1299 }
 0x2e9   : > { %v1302_v24 = vpop.eup %1301  ;;  %v738_v26 = vmul.f32 0.6931472, %v1300_v19  ;;  %v707_v41 = vsel %vm599_vm1, %v706_v37, 0.0  ;;  %v784_v19 = vadd.f32 %v783_v8, %v782_v62 }
 0x2ea   : > { %v720_v30 = vmul.f32 0.6931472, %v1302_v24  ;;  %v1304_v31 = vpop.eup %1303  ;;  %708 = vadd.xlane.f32.xlu0 %v707_v41 }
 0x2eb   : > { %v739_v33 = vadd.f32 %v738_v26, %v735_v23  ;;  %v810_v36 = vmul.f32 %v1304_v31, %v1298_v17  ;;  %v799_v46 = vsel %vm765_vm2, %v1304_v31, 0.0  ;;  %v785_v29 = vrot.slane %v784_v19, 1 }
 0x2ec   : > { %v721_v35 = vadd.f32 %v720_v30, %v717_v27 }
 0x2ed   : > { %v741_v38 = vmul.f32 %v739_v33, %v698_v22  ;;  %1305 = vrsqrt.f32 %v810_v36  ;;  %vm813_vm3 = vcmp.eq.f32.partialorder %v810_v36, inf  ;;  %v816_v48 = vand.u32 2147483648, %v810_v36 }
 0x2ee   : > { %v723_v40 = vmul.f32 %v721_v35, %v698_v22  ;;  %vm815_vm4 = vcmp.eq.f32.partialorder %v810_v36, 0.0 }
 0x2ef   : > { %v742_v42 = vsub.f32 %v740_v34, %v741_v38  ;;  %v786_v38 = vadd.f32 %v785_v29, %v784_v19 }
 0x2f0   : > { %v724_v43 = vsub.f32 %v722_v39, %v723_v40 }
 0x2f1   : > { %v743_v44 = vsel %vm599_vm1, %v742_v42, 0.0 }
 0x2f2   : > { %744 = vadd.xlane.f32.xlu1 %v743_v44  ;;  %v725_v45 = vsel %vm599_vm1, %v724_v43, 0.0 }
 0x2f3   : > { %726 = vadd.xlane.f32.xlu0 %v725_v45  ;;  %v830_v45 = vlaneseq }
 0x2f7   : > { %v1306_v47 = vpop.eup %1305  ;;  %800 = vadd.xlane.f32.xlu0 %v799_v46  ;;  %v831_v46 = vshrl.u32 %v830_v45, 7 }
 0x2f8   : > { %v812_v49 = vmul.f32 %v1306_v47, %v810_v36 }
 0x2f9   : > { %vm832_vm5 = vcmp.eq.s32.totalorder %v831_v46, 0  ;;  %vm835_vm6 = vcmp.eq.s32.totalorder %v831_v46, 1  ;;  %vm838_vm7 = vcmp.eq.s32.totalorder %v831_v46, 2  ;;  %vm841_vm8 = vcmp.eq.s32.totalorder %v831_v46, 3 }
 0x2fa   : > { %v814_v50 = vsel %vm813_vm3, %v810_v36, %v812_v49  ;;  %vm844_vm9 = vcmp.eq.s32.totalorder %v831_v46, 4 }
 0x2fb   : > { %v817_v51 = vsel %vm815_vm4, %v816_v48, %v814_v50 }
 0x2fc   : > { %v818_v52 = vsel %vm765_vm2, %v817_v51, 0.0 }
 0x2fd   : > { %819 = vadd.xlane.f32.xlu1 %v818_v52 }
 0x370   : > { %v790_v53 = vpop.xlane.xlu1 %789 }
 0x371   : > { %v791_v58 = vrot.slane %v790_v53, 4 }
 0x373   : > { %v792_v0 = vadd.f32 %v791_v58, %v790_v53 }
 0x374   : > { %v768_v55 = vpop.xlane.xlu1 %767 }
 0x375   : > { %v769_v57 = vrot.slane %v768_v55, 4  ;;  %v793_v9 = vrot.slane %v792_v0, 2 }
 0x377   : > { %v770_v59 = vadd.f32 %v769_v57, %v768_v55  ;;  %v709_v60 = vpop.xlane.xlu0 %708  ;;  %v794_v23 = vadd.f32 %v793_v9, %v792_v0 }
 0x378   : > { %v710_v61 = vrot.slane %v709_v60, 4 }
 0x379   : > { %v771_v3 = vrot.slane %v770_v59, 2  ;;  %v795_v33 = vrot.slane %v794_v23, 1 }
 0x37a   : > { %v711_v1 = vadd.f32 %v710_v61, %v709_v60 }
 0x37b   : > { %v772_v14 = vadd.f32 %v771_v3, %v770_v59  ;;  %v796_v40 = vadd.f32 %v795_v33, %v794_v23 }
 0x37c   : > { %v712_v5 = vrot.slane %v711_v1, 2 }
 0x37d   : > { %v773_v27 = vrot.slane %v772_v14, 1 }
 0x37e   : > { %v713_v12 = vadd.f32 %v712_v5, %v711_v1 }
 0x37f   : > { %v745_v63 = vpop.xlane.xlu1 %744  ;;  %v774_v36 = vadd.f32 %v773_v27, %v772_v14 }
 0x380   : > { %v746_v2 = vrot.slane %v745_v63, 4  ;;  %v727_v4 = vpop.xlane.xlu0 %726  ;;  %v714_v17 = vrot.slane %v713_v12, 1 }
 0x381   : > { %v728_v7 = vrot.slane %v727_v4, 4 }
 0x382   : > { %v747_v6 = vadd.f32 %v746_v2, %v745_v63  ;;  %v715_v21 = vadd.f32 %v714_v17, %v713_v12 }
 0x383   : > { %v729_v11 = vadd.f32 %v728_v7, %v727_v4 }
 0x384   : > { %v748_v10 = vrot.slane %v747_v6, 2  ;;  %v801_v13 = vpop.xlane.xlu0 %800  ;;  %1130 = vpush %v715_v21 }
 0x385   : > { %v730_v15 = vrot.slane %v729_v11, 2  ;;  %v802_v16 = vrot.slane %v801_v13, 4 }
 0x386   : > { %v749_v18 = vadd.f32 %v748_v10, %v747_v6 }
 0x387   : > { %v803_v20 = vadd.f32 %v802_v16, %v801_v13  ;;  %v731_v22 = vadd.f32 %v730_v15, %v729_v11 }
 0x388   : > { %v750_v24 = vrot.slane %v749_v18, 1 }
 0x389   : > { %v804_v25 = vrot.slane %v803_v20, 2  ;;  %v732_v26 = vrot.slane %v731_v22, 1 }
 0x38a   : > { %v820_v28 = vpop.xlane.xlu1 %819  ;;  %v751_v34 = vadd.f32 %v750_v24, %v749_v18 }
 0x38b   : > { %v805_v30 = vadd.f32 %v804_v25, %v803_v20  ;;  %v821_v31 = vrot.slane %v820_v28, 4  ;;  %v733_v32 = vadd.f32 %v732_v26, %v731_v22 }
 0x38d   : > { %v822_v35 = vadd.f32 %v821_v31, %v820_v28  ;;  %1132 = vpush %v733_v32  ;;  %v806_v37 = vrot.slane %v805_v30, 1 }
 0x38e   : > { %1134 = vpush %v751_v34 }
 0x38f   : > { %v823_v39 = vrot.slane %v822_v35, 2  ;;  %1136 = vpush %v774_v36  ;;  %v807_v41 = vadd.f32 %v806_v37, %v805_v30 }
 0x390   : > { %1138 = vpush %v786_v38 }
 0x391   : > { %v824_v42 = vadd.f32 %v823_v39, %v822_v35  ;;  %1140 = vpush %v796_v40 }
 0x392   : > { %1142 = vpush %v807_v41 }
 0x393   : > { %v825_v43 = vrot.slane %v824_v42, 1 }
 0x395   : > { %v826_v44 = vadd.f32 %v825_v43, %v824_v42 }
 0x397   : > { %1144 = vpush %v826_v44 }
 0x3b5   : > { %s1131_s19 = spop %1130 }
 0x3b6   : > { %v833_v47 = vstv %s1131_s19 }
 0x3b7   : > { %v834_v49 = vsel %vm832_vm5, %v833_v47, 0.0 }
 0x3be   : > { %s1133_s26 = spop %1132 }
 0x3bf   : > { %s1135_s10 = spop %1134  ;;  %v836_v48 = vstv %s1133_s26 }
 0x3c0   : > { %s1137_s11 = spop %1136  ;;  %v837_v50 = vsel %vm835_vm6, %v836_v48, %v834_v49  ;;  %v839_v51 = vstv %s1135_s10 }
 0x3c1   : > { %s1139_s22 = spop %1138  ;;  %v840_v52 = vsel %vm838_vm7, %v839_v51, %v837_v50  ;;  %v842_v53 = vstv %s1137_s11 }
 0x3c2   : > { %s1141_s17 = spop %1140  ;;  %v843_v54 = vsel %vm841_vm8, %v842_v53, %v840_v52 }
 0x3c3   : > { %s1143_s8 = spop %1142  ;;  %s798_s6 = sadd.f32 %s1141_s17, %s1139_s22 }
 0x3c5   : > { %s809_s23 = sadd.f32 %s1143_s8, %s798_s6 }
 0x3c8   : > { %s1145_s12 = spop %1144 }
 0x3c9   : > { %s828_s3 = smul.f32 2.0, %s1145_s12 }
 0x3cb   : > { %s829_s27 = ssub.f32 %s809_s23, %s828_s3 }
 0x3cd   : > { %v845_v55 = vstv %s829_s27 }
 0x3ce   : > { %v846_v56 = vsel %vm844_vm9, %v845_v55, %v843_v54 }
 0x3cf   : > { %847 = vst [vmem:[%s574_s15] sm:$0xff] %v846_v56 }
 0x3d0 PF: > { %s2327_s13 = sld [smem:[#allocation29_spill]]  ;;  %s2328_s16 = sld [smem:[#allocation43_spill]] }
 0x3d1   : > { %s862_s14 = sshll.u32 %s574_s15, 4  ;;  %s849_s29 = scalar_lea.sflag [#allocation8], %s488_s1  ;;  %s863_s14 = int_to_ptr.vmem [resolvable:$true] %s862_s14 }
 0x3d2   : > { %s1517_s25 = scalar_lea.vmem %s863_s14, 128  ;;  %p2329_p8 = scmp.ne.s32.totalorder %s2301_s30, 0 }
 0x3d3   : > { %p1518_p9 = scmp.ne.s32.totalorder %s863_s14, %s1517_s25  ;;  %s1667_s19 = smov [#allocation18]  }
 0x3d4   : > { %s1521_s26 = sshll.u32 %s1667_s19, 4  ;;  %s1522_s26 = int_to_ptr.vmem [resolvable:$false] %s1521_s26 }
 0x3d5   : > { %p1519_p5 = pnand %p1518_p9, %p2329_p8  ;;  %s1523_s10 = scalar_lea.vmem %s1522_s26, 256 }
 0x3d6   : > { %s1127_s5 = sshll.u32 %s2327_s13, 7  ;;  %p1524_p6 = scmp.lt.s32.totalorder %s863_s14, %s1522_s26 }
 0x3d7   : > { %s2172_s24 = scalar_lea.hbm %s2328_s16, %s1127_s5  ;;  %p1520_p3 = pneg %p1519_p5 }
 0x3d8   : > { %p1525_p10 = scmp.lt.s32.totalorder %s1523_s10, %s1517_s25 }
 0x3da   : > { %p1526_p0 = por %p1525_p10, %p1524_p6 }
 0x3dc   : > { %p1527_p11 = pnand %p1526_p0, %p1520_p3 }
 0x3de   : > { %1530 = shalt.err (!%p1527_p11)
}
 0x3df   : > { %s1531_s1 = scalar_lea.hbm %s2172_s24, 128  ;;  %s1535_s11 = scalar_lea.hbm %s2328_s16, 256 }
 0x3e0   : > { %p1532_p12 = scmp.ne.s32.totalorder %s2172_s24, %s1531_s1  ;;  %p1536_p1 = scmp.lt.u32.totalorder %s2172_s24, %s2328_s16 }
 0x3e1   : > { %p1537_p13 = scmp.lt.u32.totalorder %s1535_s11, %s1531_s1  ;;  %p1539_p9 = scmp.lt.u32.totalorder %s1531_s1, %s2172_s24 }
 0x3e2   : > { %p1533_p4 = pnand %p1532_p12, %p2329_p8 }
 0x3e3   : > { %p1538_p2 = por %p1537_p13, %p1536_p1 }
 0x3e4   : > { %p1534_p7 = pneg %p1533_p4 }
 0x3e5   : > { %p1540_p5 = por %p1539_p9, %p1538_p2 }
 0x3e7   : > { %p1541_p3 = pnand %p1540_p5, %p1534_p7 }
 0x3e9   : > { %1544 = shalt.err (!%p1541_p3)
}
 0x3ea   : > { %1160 = dma.vmem_to_hbm [thread:$0]  (%p2329_p8), %s863_s14, 128, %s2172_s24, %s849_s29  }
 0x3eb PF: > { %s2330_s8 = sld [smem:[#allocation32_spill]]  ;;  %s2331_s6 = sld [smem:[#allocation25_spill]] }
 0x3ec   : > { %s2332_s12 = sld [smem:[#allocation38_spill]] }
 0x3f1   : > { %p1189_p6 = scmp.ge.s32.totalorder %s2330_s8, 2  ;;  %s874_s23 = sand.u32 1, %s2331_s6  }
 0x3f2   : > { %p2333_p10 = scmp.ne.s32.totalorder %s2332_s12, 0  ;;  %s875_s3 = scalar_lea.sflag [#allocation8], %s874_s23 }
 0x3f4   : > { %p1185_p0 = pnand %p1189_p6, %p2333_p10 }
 0x3f6   : > { %1610 = dma.done.wait (!%p1185_p0), %s875_s3, 128  }
 0x3f7   : > { %1612 = vsyncadd (!%p1185_p0), %s875_s3, 4294967168  ;;  %s33_s15 = sadd.s32 1, %s2330_s8   ;;  %s2334_s13 = sld [smem:[#allocation26_spill]] }
 0x3f8   : > { %p30_p11 = scmp.ge.s32.totalorder %s33_s15, 10   ;;  %s2335_s29 = sld [smem:[#allocation37_spill]] }
 0x3f9   : > { %s2336_s5 = sld [smem:[#allocation27_spill]]  ;;  %s2337_s10 = sld [smem:[#allocation35_spill]] }
 0x3fa   : > { %s2338_s11 = sld [smem:[#allocation30_spill]]  ;;  %s2339_s12 = sld [smem:[#allocation31_spill]] }
 0x3fb   : > { %s2340_s20 = sld [smem:[#allocation33_spill]]  ;;  %s2341_s14 = sld [smem:[#allocation34_spill]] }
 0x3fc   : > { %s2342_s27 = smov %s1619_s28  ;;  %s2344_s30 = smov %s1631_s9 }
 0x3fd   : > { %s2343_s28 = smov %s2334_s13  ;;  %32 = sbr.rel (!%p30_p11) target bundleno = 21 (0x15), region = 186 }
 0x3ff   : > { %s2345_s9 = smov %s2336_s5 }
 0x401   : > { %s2346_s13 = smov %s2340_s20 }
 0x404   :  { %880 = vsyncpa [#allocation7], 1 }
 0x405   :  { %882 = vsyncpa [#allocation7 + $0x1], 1 }
 0x406   :  { %883 = vsyncpa [#allocation10], 1 }
 0x407   :  { %885 = vsyncpa [#allocation10 + $0x1], 1 }
 0x408   :  { %886 = vsyncpa [#allocation13], 1 }
 0x409   :  { %888 = vsyncpa [#allocation13 + $0x1], 1 }
 0x40a   :  { %889 = vsyncpa [#allocation16], 1 }
 0x40b   :  { %891 = vsyncpa [#allocation16 + $0x1], 1 }
 0x40c   :  { %892 = vsyncpa [#allocation8], 1 }
 0x40d   :  { %894 = vsyncpa [#allocation8 + $0x1], 1 }

</bundles_post_ra>
